<compile_context>
chip_gen: v7x
topology: tpu7x:2x2x1
jax: 0.10.0
libtpu: 0.0.40
codegen_flags: <defaults>
</compile_context>

<pallas_src>
import functools
import math

import jax
import jax.numpy as jnp
from jax import lax
from jax.experimental import pallas as pl
from jax.experimental.pallas import tpu as pltpu

# Small, TPU-tile-friendly stand-ins for the module's d_model=768 / d_ff=3072.
# Multiples of 256 so the toy shapes also fill a 256-wide MXU (v6e/v7x).
D_MODEL = 256
D_FF = 1024

_SQRT_2_OVER_PI = 0.7978845608028654


def _gelu_exact(x):
    # x * 0.5 * (1 + erf(x / sqrt(2)))  -- identical to the reference gelu()
    return x * 0.5 * (1.0 + lax.erf(x / math.sqrt(2.0)))


def _gelu_tanh(x):
    # 0.5 * x * (1 + tanh(sqrt(2/pi) * (x + 0.044715 x^3))), computed in x.dtype.
    inner = _SQRT_2_OVER_PI * (x + 0.044715 * (x * x * x))
    return 0.5 * x * (1.0 + jnp.tanh(inner))


def _ffn_activation(h_f32, use_tanh_gelu):
    """Post-fc1 activation; returns the bf16 operand for the fc2 matmul."""
    if use_tanh_gelu:
        # v6e/v7x fast path: bf16 tanh-approx GELU (tanh -> EUP, bf16 -> half VALU).
        # TODO(synk): intentional numerics deviation from the module's exact-erf
        # GELU on v6e/v7x; validate against the model's accuracy budget.
        return _gelu_tanh(h_f32.astype(jnp.bfloat16))
    # v5e & older: exact-erf GELU in f32 (matches the PyTorch module).
    return _gelu_exact(h_f32).astype(jnp.bfloat16)


def _default_use_tanh_gelu():
    # v6e/v7x: the f32 erf polynomial saturates the VALU slot before the MXU.
    # v5e and older: erf hides under the slow MXU; no bf16 VALU/EUP; keep exact.
    try:
        kind = jax.devices()[0].device_kind.lower()
    except Exception:
        return True
    for old_gen in ("v2", "v3", "v4", "v5"):
        if old_gen in kind:
            return False
    return True


def _round_up(x, m):
    return ((x + m - 1) // m) * m


def _vmem_limit_bytes(tm, d_model, d_ff, d_ff_chunk):
    """Scoped-VMEM limit from actual residency + headroom (review item)."""
    bf16, f32 = 2, 4
    resident = (
        2 * d_model * d_ff * bf16           # W1 + W2, single-buffered
        + (d_ff + d_model) * f32            # biases
        + tm * d_model * bf16 * 2           # x tile, double-buffered
        + tm * d_model * f32 * 2            # out tile, double-buffered
        + tm * d_model * f32                # f32 accumulator scratch
        + tm * d_ff_chunk * (f32 + bf16)    # live h chunk (pre-/post-activation)
    )
    limit = int(resident * 1.5) + (4 << 20)  # ~50% headroom + compiler scratch
    return max(16 << 20, min(limit, 64 << 20))  # safe on v5e..v7x (64 MiB VMEM)


def ffn_kernel(x_ref, w1_ref, b1_ref, w2_ref, b2_ref, o_ref, acc_ref, *,
               d_ff_chunk, use_tanh_gelu):
    # x_ref:  (tm, d_model)  bf16      w1_ref: (d_model, d_ff) bf16
    # b1_ref: (1, d_ff)      f32       w2_ref: (d_ff, d_model) bf16
    # b2_ref: (1, d_model)   f32       o_ref:  (tm, d_model)   f32
    # acc_ref: (tm, d_model) f32 VMEM scratch accumulator
    d_ff = w1_ref.shape[1]
    n_chunks = d_ff // d_ff_chunk

    def chunk_out(start):
        w1c = w1_ref[:, pl.ds(start, d_ff_chunk)]          # (d_model, chunk) bf16
        b1c = b1_ref[:, pl.ds(start, d_ff_chunk)]          # (1, chunk)       f32
        # fc1 chunk: bf16 operands, f32 accumulation; bias add in f32.
        h = jnp.dot(x_ref[...], w1c, preferred_element_type=jnp.float32) + b1c
        h = _ffn_activation(h, use_tanh_gelu)               # -> bf16
        w2c = w2_ref[pl.ds(start, d_ff_chunk), :]          # (chunk, d_model) bf16
        return jnp.dot(h, w2c, preferred_element_type=jnp.float32)

    if n_chunks == 1:
        # Single chunk: skip the accumulator round trip entirely.
        o_ref[...] = (chunk_out(0) + b2_ref[...]).astype(o_ref.dtype)
        return

    # Chunk 0 assigns and folds b2 in (no zero-fill, no final add pass).
    acc_ref[...] = chunk_out(0) + b2_ref[...]

    def body(c, carry):
        start = pl.multiple_of(c * d_ff_chunk, d_ff_chunk)
        acc_ref[...] += chunk_out(start)
        return carry

    # At most a few chunks (e.g. 3 at d_ff=3072, chunk=1024) -> unroll is cheap.
    lax.fori_loop(1, n_chunks, body, 0, unroll=True)

    o_ref[...] = acc_ref[...].astype(o_ref.dtype)


def poswise_feed_forward(x, w1, b1, w2, b2, *, tm=512, d_ff_chunk=1024,
                         use_tanh_gelu=None):
    """x: (batch, seq, d_model) f32.  w1: (d_model, d_ff), w2: (d_ff, d_model)."""
    batch, seq, d_model = x.shape
    d_ff = w1.shape[1]
    M = batch * seq

    if use_tanh_gelu is None:
        use_tanh_gelu = _default_use_tanh_gelu()

    d_ff_chunk = min(d_ff_chunk, d_ff)
    if d_ff % d_ff_chunk != 0:
        d_ff_chunk = d_ff

    # Clamp the row tile for small M (multiple of 8 for sublane tiling).  No host
    # side padding: the grid uses cdiv and Pallas masks the ragged last tile.
    # Note for v7x: keep the grid >= 2 blocks so ("parallel",) feeds both TCs;
    # for short sequences prefer tm=256 there.
    tm = max(8, min(tm, _round_up(M, 8)))
    grid_m = pl.cdiv(M, tm)

    # bf16 operands for the MXU; biases stay f32 (added in f32 inside the kernel).
    x2d = x.reshape(M, d_model).astype(jnp.bfloat16)
    w1_bf = w1.astype(jnp.bfloat16)
    w2_bf = w2.astype(jnp.bfloat16)
    b1_2d = b1.reshape(1, d_ff).astype(jnp.float32)
    b2_2d = b2.reshape(1, d_model).astype(jnp.float32)

    kernel = functools.partial(ffn_kernel, d_ff_chunk=d_ff_chunk,
                               use_tanh_gelu=use_tanh_gelu)

    out2d = pl.pallas_call(
        kernel,
        out_shape=jax.ShapeDtypeStruct((M, d_model), x.dtype),
        grid_spec=pltpu.PrefetchScalarGridSpec(
            num_scalar_prefetch=0,
            grid=(grid_m,),
            in_specs=[
                # Activations: tiled along M, double-buffered (default).
                pl.BlockSpec((tm, d_model), lambda i: (i, 0)),
                # Grid-invariant weights / biases: single-buffered (VMEM-resident).
                pl.BlockSpec((d_model, d_ff), lambda i: (0, 0),
                             pipeline_mode=pl.Buffered(1)),
                pl.BlockSpec((1, d_ff), lambda i: (0, 0),
                             pipeline_mode=pl.Buffered(1)),
                pl.BlockSpec((d_ff, d_model), lambda i: (0, 0),
                             pipeline_mode=pl.Buffered(1)),
                pl.BlockSpec((1, d_model), lambda i: (0, 0),
                             pipeline_mode=pl.Buffered(1)),
            ],
            out_specs=pl.BlockSpec((tm, d_model), lambda i: (i, 0)),
            scratch_shapes=[pltpu.VMEM((tm, d_model), jnp.float32)],
        ),
        compiler_params=pltpu.CompilerParams(
            dimension_semantics=("parallel",),
            vmem_limit_bytes=_vmem_limit_bytes(tm, d_model, d_ff, d_ff_chunk),
        ),
    )(x2d, w1_bf, b1_2d, w2_bf, b2_2d)

    return out2d.reshape(batch, seq, d_model)


def _reference_matched(x, w1, b1, w2, b2, use_tanh_gelu):
    """Same math as the kernel (bf16 operands, f32 accumulation, same GELU)."""
    h = jnp.einsum("bsd,df->bsf", x.astype(jnp.bfloat16), w1.astype(jnp.bfloat16),
                   preferred_element_type=jnp.float32) + b1
    h = _ffn_activation(h, use_tanh_gelu)
    out = jnp.einsum("bsf,fd->bsd", h, w2.astype(jnp.bfloat16),
                     preferred_element_type=jnp.float32) + b2
    return out


def _reference_f32(x, w1, b1, w2, b2):
    """Exact f32 math of the PyTorch module (exact-erf GELU)."""
    h = jnp.einsum("bsd,df->bsf", x, w1) + b1
    h = _gelu_exact(h)
    return jnp.einsum("bsf,fd->bsd", h, w2) + b2


if __name__ == "__main__":
    key = jax.random.PRNGKey(0)
    k_x, k_x2, k_w1, k_b1, k_w2, k_b2 = jax.random.split(key, 6)

    batch, seq = 2, 8
    x = jax.random.normal(k_x, (batch, seq, D_MODEL), dtype=jnp.float32)

    # Deterministic parameter init mimicking nn.Linear's uniform(-1/sqrt(in), ...).
    # Stored directly as (in, out) so the kernel computes x @ W, equivalent to
    # PyTorch's x @ weight.T with weight of shape (out, in).
    lim1 = 1.0 / math.sqrt(D_MODEL)
    lim2 = 1.0 / math.sqrt(D_FF)
    w1 = jax.random.uniform(k_w1, (D_MODEL, D_FF), jnp.float32, -lim1, lim1)
    b1 = jax.random.uniform(k_b1, (D_FF,), jnp.float32, -lim1, lim1)
    w2 = jax.random.uniform(k_w2, (D_FF, D_MODEL), jnp.float32, -lim2, lim2)
    b2 = jax.random.uniform(k_b2, (D_MODEL,), jnp.float32, -lim2, lim2)

    use_tanh = _default_use_tanh_gelu()

    # --- Test 1: small single-tile case (M = 16) ---------------------------------
    out = jax.block_until_ready(
        poswise_feed_forward(x, w1, b1, w2, b2, use_tanh_gelu=use_tanh))
    assert out.shape == (batch, seq, D_MODEL)

    ref_bf = _reference_matched(x, w1, b1, w2, b2, use_tanh)
    assert jnp.allclose(out, ref_bf, atol=3e-3, rtol=3e-3), "mismatch vs matched reference"

    ref_f32 = _reference_f32(x, w1, b1, w2, b2)
    assert jnp.allclose(out, ref_f32, atol=5e-2, rtol=5e-2), "mismatch vs f32 reference"

    # --- Test 2: multi-tile grid with a ragged last tile (M = 21, tm = 8) and
    #             multiple d_ff chunks (256 over d_ff = 1024) -----------------------
    x2 = jax.random.normal(k_x2, (3, 7, D_MODEL), dtype=jnp.float32)
    out2 = jax.block_until_ready(
        poswise_feed_forward(x2, w1, b1, w2, b2, tm=8, d_ff_chunk=256,
                             use_tanh_gelu=use_tanh))
    assert out2.shape == (3, 7, D_MODEL)
    ref2 = _reference_matched(x2, w1, b1, w2, b2, use_tanh)
    assert jnp.allclose(out2, ref2, atol=3e-3, rtol=3e-3), "mismatch on ragged multi-tile case"

    print("KERNEL_OK")
</pallas_src>

<mosaic_0001>
module attributes {stable_mosaic.version = 11 : i64} {
  func.func @ffn_kernel(%arg0: i32, %arg1: memref<16x256xbf16, #tpu.memory_space<vmem>>, %arg2: memref<256x1024xbf16, #tpu.memory_space<vmem>>, %arg3: memref<1x1024xf32, #tpu.memory_space<vmem>>, %arg4: memref<1024x256xbf16, #tpu.memory_space<vmem>>, %arg5: memref<1x256xf32, #tpu.memory_space<vmem>>, %arg6: memref<16x256xf32, #tpu.memory_space<vmem>>, %arg7: memref<16x256xf32, #tpu.memory_space<vmem>>) attributes {dimension_semantics = [#tpu.dimension_semantics<parallel>], iteration_bounds = array<i64: 1>, scalar_prefetch = 0 : i64, scratch_operands = 1 : i64, tpu.core_type = #tpu.core_type<tc>, window_params = [{transform_indices = @transform_0, window_bounds = array<i64: 16, 256>}, {pipeline_mode = #tpu.pipeline_mode<synchronous>, transform_indices = @transform_1, window_bounds = array<i64: 256, 1024>}, {pipeline_mode = #tpu.pipeline_mode<synchronous>, transform_indices = @transform_2, window_bounds = array<i64: 1, 1024>}, {pipeline_mode = #tpu.pipeline_mode<synchronous>, transform_indices = @transform_3, window_bounds = array<i64: 1024, 256>}, {pipeline_mode = #tpu.pipeline_mode<synchronous>, transform_indices = @transform_4, window_bounds = array<i64: 1, 256>}, {transform_indices = @transform_5, window_bounds = array<i64: 16, 256>}]} {
    %c0 = arith.constant 0 : index
    %c0_0 = arith.constant 0 : index
    %0 = vector.load %arg2[%c0, %c0_0] : memref<256x1024xbf16, #tpu.memory_space<vmem>>, vector<256x1024xbf16>
    %c0_1 = arith.constant 0 : index
    %c0_2 = arith.constant 0 : index
    %1 = vector.load %arg3[%c0_1, %c0_2] : memref<1x1024xf32, #tpu.memory_space<vmem>>, vector<1x1024xf32>
    %c0_3 = arith.constant 0 : index
    %c0_4 = arith.constant 0 : index
    %2 = vector.load %arg1[%c0_3, %c0_4] : memref<16x256xbf16, #tpu.memory_space<vmem>>, vector<16x256xbf16>
    %cst = arith.constant dense<0.000000e+00> : vector<16x1024xf32>
    %3 = tpu.matmul %2, %0, %cst {dimension_numbers = #tpu.dot_dimension_numbers<[1], [0], [0], [1], [0, 0, 1, 1], [], []>} : vector<16x256xbf16>, vector<256x1024xbf16>, vector<16x1024xf32> -> vector<16x1024xf32>
    %4 = vector.broadcast %1 : vector<1x1024xf32> to vector<16x1024xf32>
    %5 = arith.addf %3, %4 : vector<16x1024xf32>
    %6 = arith.truncf %5 : vector<16x1024xf32> to vector<16x1024xbf16>
    %7 = arith.mulf %6, %6 : vector<16x1024xbf16>
    %8 = arith.mulf %7, %6 : vector<16x1024xbf16>
    %cst_5 = arith.constant 4.467770e-02 : bf16
    %9 = vector.broadcast %cst_5 : bf16 to vector<16x1024xbf16>
    %10 = arith.mulf %9, %8 : vector<16x1024xbf16>
    %11 = arith.addf %6, %10 : vector<16x1024xbf16>
    %cst_6 = arith.constant 7.968750e-01 : bf16
    %12 = vector.broadcast %cst_6 : bf16 to vector<16x1024xbf16>
    %13 = arith.mulf %12, %11 : vector<16x1024xbf16>
    %cst_7 = arith.constant 5.000000e-01 : bf16
    %14 = vector.broadcast %cst_7 : bf16 to vector<16x1024xbf16>
    %15 = arith.mulf %14, %6 : vector<16x1024xbf16>
    %16 = math.tanh %13 : vector<16x1024xbf16>
    %cst_8 = arith.constant 1.000000e+00 : bf16
    %17 = vector.broadcast %cst_8 : bf16 to vector<16x1024xbf16>
    %18 = arith.addf %17, %16 : vector<16x1024xbf16>
    %19 = arith.mulf %15, %18 : vector<16x1024xbf16>
    %c0_9 = arith.constant 0 : index
    %c0_10 = arith.constant 0 : index
    %20 = vector.load %arg4[%c0_9, %c0_10] : memref<1024x256xbf16, #tpu.memory_space<vmem>>, vector<1024x256xbf16>
    %cst_11 = arith.constant dense<0.000000e+00> : vector<16x256xf32>
    %21 = tpu.matmul %19, %20, %cst_11 {dimension_numbers = #tpu.dot_dimension_numbers<[1], [0], [0], [1], [0, 0, 1, 1], [], []>} : vector<16x1024xbf16>, vector<1024x256xbf16>, vector<16x256xf32> -> vector<16x256xf32>
    %c0_12 = arith.constant 0 : index
    %c0_13 = arith.constant 0 : index
    %22 = vector.load %arg5[%c0_12, %c0_13] : memref<1x256xf32, #tpu.memory_space<vmem>>, vector<1x256xf32>
    %23 = vector.broadcast %22 : vector<1x256xf32> to vector<16x256xf32>
    %24 = arith.addf %21, %23 : vector<16x256xf32>
    %c0_14 = arith.constant 0 : index
    %c0_15 = arith.constant 0 : index
    %25 = vector.load %arg6[%c0_14, %c0_15] : memref<16x256xf32, #tpu.memory_space<vmem>>, vector<16x256xf32>
    tpu.vector_store %arg6[%c0_14, %c0_15], %24 {strides = array<i32>} : memref<16x256xf32, #tpu.memory_space<vmem>>, vector<16x256xf32>,
    return
  }
  func.func @transform_0(%arg0: i32) -> (i32, i32) {
    %c0_i32 = arith.constant 0 : i32
    %c0_i32_0 = arith.constant 0 : i32
    return %arg0, %c0_i32 : i32, i32
  }
  func.func @transform_1(%arg0: i32) -> (i32, i32) {
    %c0_i32 = arith.constant 0 : i32
    %c0_i32_0 = arith.constant 0 : i32
    %c0_i32_1 = arith.constant 0 : i32
    return %c0_i32, %c0_i32_0 : i32, i32
  }
  func.func @transform_2(%arg0: i32) -> (i32, i32) {
    %c0_i32 = arith.constant 0 : i32
    %c0_i32_0 = arith.constant 0 : i32
    %c0_i32_1 = arith.constant 0 : i32
    return %c0_i32, %c0_i32_0 : i32, i32
  }
  func.func @transform_3(%arg0: i32) -> (i32, i32) {
    %c0_i32 = arith.constant 0 : i32
    %c0_i32_0 = arith.constant 0 : i32
    %c0_i32_1 = arith.constant 0 : i32
    return %c0_i32, %c0_i32_0 : i32, i32
  }
  func.func @transform_4(%arg0: i32) -> (i32, i32) {
    %c0_i32 = arith.constant 0 : i32
    %c0_i32_0 = arith.constant 0 : i32
    %c0_i32_1 = arith.constant 0 : i32
    return %c0_i32, %c0_i32_0 : i32, i32
  }
  func.func @transform_5(%arg0: i32) -> (i32, i32) {
    %c0_i32 = arith.constant 0 : i32
    %c0_i32_0 = arith.constant 0 : i32
    return %arg0, %c0_i32 : i32, i32
  }
}

</mosaic_0001>

<bundles_post_ra>
// kernel: tpu_custom_call.1
= control target key start
LH: loop header
LB: loop body
LE: loop exit
PB: predicated region body
PF: predicated region fallthrough
CT: control target
= control target key end

     0   :  { %10 = vsyncpa [#allocation4], 0  ;;  %s2898_s0 = inlined_call_operand.hbm [shape: bf16[16,256], index: 0, kind: input, shape index: {}]   ;;  %s2899_s1 = inlined_call_operand.hbm [shape: bf16[256,1024], index: 1, kind: input, shape index: {}]   ;;  %s2900_s2 = inlined_call_operand.hbm [shape: f32[1,1024], index: 2, kind: input, shape index: {}]   ;;  %s2901_s3 = inlined_call_operand.hbm [shape: bf16[1024,256], index: 3, kind: input, shape index: {}]   ;;  %s2902_s4 = inlined_call_operand.vmem [shape: f32[1,256], index: 4, kind: input, shape index: {}]   ;;  %s2903_s5 = inlined_call_operand.hbm [shape: f32[16,256], index: 5, kind: output, shape index: {}]  }
   0x1   :  { %11 = vsyncpa [#allocation7], 0 }
   0x2   :  { %12 = vsyncpa [#allocation10], 0 }
   0x3   :  { %13 = vsyncpa [#allocation5], 0  ;;  %s2741_s18 = smov [#allocation6]   ;;  %s2623_s22 = scalar_lea.hbm %s2899_s1, 16384 }
   0x4   :  { %s31_s19 = sshll.u32 %s2741_s18, 4  ;;  %p2624_p0 = scmp.ne.s32.totalorder %s2899_s1, %s2623_s22  ;;  %s32_s19 = int_to_ptr.vmem [resolvable:$true] %s31_s19 }
   0x5   :  { %p2627_p1 = scmp.lt.u32.totalorder %s2623_s22, %s2899_s1 }
   0x7   :  { %p2629_p2 = pnand %p2627_p1, %p2624_p0 }
   0x9   :  { %2632 = shalt.err (!%p2629_p2)
}
   0xa   :  { %s2633_s27 = scalar_lea.vmem %s32_s19, 16384  ;;  %p2638_p4 = scmp.lt.s32.totalorder %s32_s19, %s32_s19 }
   0xb   :  { %p2634_p3 = scmp.ne.s32.totalorder %s32_s19, %s2633_s27  ;;  %p2639_p5 = scmp.lt.s32.totalorder %s2633_s27, %s2633_s27 }
   0xd   :  { %p2640_p6 = por %p2639_p5, %p2638_p4 }
   0xf   :  { %p2641_p7 = pnand %p2640_p6, %p2634_p3 }
  0x11   :  { %2644 = shalt.err (!%p2641_p7)
}
  0x12   :  { %s2742_s28 = smov 512   ;;  %s2743_s29 = smov 32  }
  0x13   :  { %37 = dma.hbm_to_vmem [thread:$0]  %s2899_s1, 16384, %s32_s19, [#allocation7], %s2742_s28, %s2742_s28, %s2743_s29  }
  0x14   :  { %s2744_s7 = smov [#allocation3]   ;;  %s2645_s11 = scalar_lea.hbm %s2898_s0, 256 }
  0x15   :  { %s19_s8 = sshll.u32 %s2744_s7, 4  ;;  %p2646_p8 = scmp.ne.s32.totalorder %s2898_s0, %s2645_s11  ;;  %s20_s8 = int_to_ptr.vmem [resolvable:$true] %s19_s8 }
  0x16   :  { %p2649_p9 = scmp.lt.u32.totalorder %s2645_s11, %s2898_s0 }
  0x18   :  { %p2651_p10 = pnand %p2649_p9, %p2646_p8 }
  0x1a   :  { %2654 = shalt.err (!%p2651_p10)
}
  0x1b   :  { %s2655_s16 = scalar_lea.vmem %s20_s8, 256  ;;  %p2660_p12 = scmp.lt.s32.totalorder %s20_s8, %s20_s8 }
  0x1c   :  { %p2656_p11 = scmp.ne.s32.totalorder %s20_s8, %s2655_s16  ;;  %p2661_p13 = scmp.lt.s32.totalorder %s2655_s16, %s2655_s16 }
  0x1e   :  { %p2662_p0 = por %p2661_p13, %p2660_p12 }
  0x20   :  { %p2663_p1 = pnand %p2662_p0, %p2656_p11 }
  0x22   :  { %2666 = shalt.err (!%p2663_p1)
}
  0x23   :  { %s2745_s1 = smov 128   ;;  %s2746_s17 = smov 8  }
  0x24   :  { %25 = dma.hbm_to_vmem [thread:$0]  %s2898_s0, 256, %s20_s8, [#allocation4], %s2745_s1, %s2745_s1, %s2746_s17  }
  0x25   :  { %s2747_s20 = smov [#allocation8]   ;;  %s2748_s22 = smov [#allocation9]  }
  0x26   :  { %s44_s21 = sshll.u32 %s2747_s20, 4  ;;  %s53_s23 = sshll.u32 %s2748_s22, 4  ;;  %s45_s21 = int_to_ptr.vmem [resolvable:$true] %s44_s21  ;;  %s2809_s23 = int_to_ptr.vmem [resolvable:$true] %s53_s23 }
  0x27   :  { %s2667_s26 = scalar_lea.hbm %s2900_s2, 128 }
  0x28   :  { %p2668_p2 = scmp.ne.s32.totalorder %s2900_s2, %s2667_s26  ;;  %p2671_p3 = scmp.lt.u32.totalorder %s2667_s26, %s2900_s2 }
  0x2a   :  { %p2673_p4 = pnand %p2671_p3, %p2668_p2 }
  0x2c   :  { %2676 = shalt.err (!%p2673_p4)
}
  0x2d   :  { %s2677_s0 = scalar_lea.vmem %s45_s21, 128  ;;  %p2682_p6 = scmp.lt.s32.totalorder %s45_s21, %s45_s21 }
  0x2e   :  { %p2678_p5 = scmp.ne.s32.totalorder %s45_s21, %s2677_s0  ;;  %p2683_p7 = scmp.lt.s32.totalorder %s2677_s0, %s2677_s0 }
  0x30   :  { %p2684_p8 = por %p2683_p7, %p2682_p6 }
  0x32   :  { %p2685_p9 = pnand %p2684_p8, %p2678_p5 }
  0x34   :  { %2688 = shalt.err (!%p2685_p9)
}
  0x35   :  { %47 = dma.hbm_to_vmem [thread:$0]  %s2900_s2, 128, %s45_s21, [#allocation7]  }
  0x36   :  { %s2689_s10 = scalar_lea.hbm %s2901_s3, 16384 }
  0x37   :  { %p2690_p10 = scmp.ne.s32.totalorder %s2901_s3, %s2689_s10  ;;  %p2693_p11 = scmp.lt.u32.totalorder %s2689_s10, %s2901_s3 }
  0x39   :  { %p2695_p12 = pnand %p2693_p11, %p2690_p10 }
  0x3b   :  { %2698 = shalt.err (!%p2695_p12)
}
  0x3c   :  { %s2699_s15 = scalar_lea.vmem %s2809_s23, 16384  ;;  %p2704_p0 = scmp.lt.s32.totalorder %s2809_s23, %s2809_s23 }
  0x3d   :  { %p2700_p13 = scmp.ne.s32.totalorder %s2809_s23, %s2699_s15  ;;  %p2705_p1 = scmp.lt.s32.totalorder %s2699_s15, %s2699_s15 }
  0x3f   :  { %p2706_p2 = por %p2705_p1, %p2704_p0 }
  0x41   :  { %p2707_p3 = pnand %p2706_p2, %p2700_p13 }
  0x43   :  { %2710 = shalt.err (!%p2707_p3)
}
  0x44   :  { %59 = dma.hbm_to_vmem [thread:$0]  %s2901_s3, 16384, %s2809_s23, [#allocation10], %s2745_s1, %s2745_s1, %s2746_s17  }
  0x45   :  { %2733 = dma.done.wait [#allocation4], 256  }
  0x46   :  { %2734 = vsyncadd [#allocation4], 4294967040 }
  0x47   :  { %2735 = dma.done.wait [#allocation7], 16512  }
  0x48   :  { %2736 = vsyncadd [#allocation7], 4294950784 }
  0x49   :  { %2737 = dma.done.wait [#allocation10], 16384  }
  0x4a   :  { %2738 = vsyncadd [#allocation10], 4294950912  ;;  %v78_v0 = vld [vmem:[#allocation6] sm:$0xff]  ;;  %v2843_v17 = vld [vmem:[#allocation3 + $0x4] ss:$8 sps:$4 sm:$0xff]   ;;  %s2749_s17 = smov [#allocation11]  }
  0x4b   :  { %v82_v1 = vld [vmem:[#allocation6 + $0x20] sm:$0xff]  ;;  %932 = vmatprep.mubr.bf16.mxu1 %v2843_v17  ;;  %v79_v63 = vld [vmem:[#allocation6 + $0x8] sm:$0xff]  ;;  %s2113_s18 = sshll.u32 %s2749_s17, 4  ;;  %s2114_s18 = int_to_ptr.vmem [resolvable:$true] %s2113_s18 }
  0x4c   :  { %v86_v2 = vld [vmem:[#allocation6 + $0x40] sm:$0xff]  ;;  %v2130_v3 = vcombine.high %v78_v0, %v82_v1  ;;  %v2129_v4 = vcombine.low %v78_v0, %v82_v1  ;;  %v83_v0 = vld [vmem:[#allocation6 + $0x28] sm:$0xff]  ;;  %p2716_p5 = scmp.lt.s32.totalorder %s2114_s18, %s2114_s18 }
  0x4d   :  { %v90_v5 = vld [vmem:[#allocation6 + $0x60] sm:$0xff] }
  0x4e   :  { %v2138_v6 = vcombine.high %v86_v2, %v90_v5  ;;  %v94_v7 = vld [vmem:[#allocation6 + $0x80] sm:$0xff]  ;;  %900 = vmatprep.subr.bf16.mxu1 %v2130_v3  ;;  %v2137_v9 = vcombine.low %v86_v2, %v90_v5  ;;  %v87_v3 = vld [vmem:[#allocation6 + $0x48] sm:$0xff]  ;;  %v2846_v5 = vld [vmem:[#allocation3] ss:$8 sps:$4 sm:$0xff]  }
  0x4f   :  { %v98_v8 = vld [vmem:[#allocation6 + $0xa0] sm:$0xff]  ;;  %901 = vmatpush1.bf16.msra.mxu1 %v2129_v4  ;;  %v91_v4 = vld [vmem:[#allocation6 + $0x68] sm:$0xff] }
  0x50   :  { %902 = vmatprep.subr.bf16.mxu1 %v2138_v6  ;;  %v2146_v10 = vcombine.high %v94_v7, %v98_v8  ;;  %v102_v11 = vld [vmem:[#allocation6 + $0xc0] sm:$0xff]  ;;  %v2145_v13 = vcombine.low %v94_v7, %v98_v8  ;;  %v2132_v6 = vcombine.high %v79_v63, %v83_v0  ;;  %v2131_v7 = vcombine.low %v79_v63, %v83_v0  ;;  %v95_v8 = vld [vmem:[#allocation6 + $0x88] sm:$0xff] }
  0x51   :  { %v106_v12 = vld [vmem:[#allocation6 + $0xe0] sm:$0xff]  ;;  %v203_v63 = vld [vmem:[#allocation6 + $0x3e8] sm:$0xff] }
  0x52   :  { %v2154_v14 = vcombine.high %v102_v11, %v106_v12  ;;  %v110_v15 = vld [vmem:[#allocation6 + $0x100] sm:$0xff]  ;;  %v2153_v18 = vcombine.low %v102_v11, %v106_v12  ;;  %v2139_v11 = vcombine.low %v87_v3, %v91_v4  ;;  %v103_v12 = vld [vmem:[#allocation6 + $0xc8] sm:$0xff] }
  0x53   :  { %903 = vmatpush1.bf16.msra.mxu1 %v2137_v9  ;;  %v114_v16 = vld [vmem:[#allocation6 + $0x120] sm:$0xff]  ;;  %v99_v9 = vld [vmem:[#allocation6 + $0xa8] sm:$0xff] }
  0x54   :  { %904 = vmatprep.subr.bf16.mxu1 %v2146_v10  ;;  %v2162_v19 = vcombine.high %v110_v15, %v114_v16  ;;  %v118_v20 = vld [vmem:[#allocation6 + $0x140] sm:$0xff]  ;;  %v2161_v22 = vcombine.low %v110_v15, %v114_v16  ;;  %v2140_v10 = vcombine.high %v87_v3, %v91_v4  ;;  %v2147_v15 = vcombine.low %v95_v8, %v99_v9  ;;  %v111_v16 = vld [vmem:[#allocation6 + $0x108] sm:$0xff]  ;;  %v80_v4 = vld [vmem:[#allocation6 + $0x10] sm:$0xff] }
  0x55   :  { %v122_v21 = vld [vmem:[#allocation6 + $0x160] sm:$0xff]  ;;  %v2415_v0 = vld [vmem:[#allocation9 + $0x4] ss:$8 sps:$4 sm:$0xff]  }
  0x56   :  { %v2170_v23 = vcombine.high %v118_v20, %v122_v21  ;;  %v126_v24 = vld [vmem:[#allocation6 + $0x180] sm:$0xff]  ;;  %v2169_v26 = vcombine.low %v118_v20, %v122_v21  ;;  %v119_v21 = vld [vmem:[#allocation6 + $0x148] sm:$0xff]  ;;  %1932 = vmatprep.subr.bf16.mxu0 %v2415_v0 }
  0x57   :  { %905 = vmatpush1.bf16.msra.mxu1 %v2145_v13  ;;  %v130_v25 = vld [vmem:[#allocation6 + $0x1a0] sm:$0xff]  ;;  %v107_v13 = vld [vmem:[#allocation6 + $0xe8] sm:$0xff] }
  0x58   :  { %906 = vmatprep.subr.bf16.mxu1 %v2154_v14  ;;  %v2178_v27 = vcombine.high %v126_v24, %v130_v25  ;;  %v134_v28 = vld [vmem:[#allocation6 + $0x1c0] sm:$0xff]  ;;  %v2177_v30 = vcombine.low %v126_v24, %v130_v25  ;;  %v2148_v14 = vcombine.high %v95_v8, %v99_v9  ;;  %v2155_v20 = vcombine.low %v103_v12, %v107_v13  ;;  %v2447_v0 = vld [vmem:[#allocation9 + $0xa0] ss:$8 sps:$4 sm:$0xff]  }
  0x59   :  { %v138_v29 = vld [vmem:[#allocation6 + $0x1e0] sm:$0xff] }
  0x5a   :  { %v2186_v31 = vcombine.high %v134_v28, %v138_v29  ;;  %v142_v32 = vld [vmem:[#allocation6 + $0x200] sm:$0xff]  ;;  %v2185_v34 = vcombine.low %v134_v28, %v138_v29 }
  0x5b   :  { %907 = vmatpush1.bf16.msra.mxu1 %v2153_v18  ;;  %v146_v33 = vld [vmem:[#allocation6 + $0x220] sm:$0xff]  ;;  %v115_v18 = vld [vmem:[#allocation6 + $0x128] sm:$0xff] }
  0x5c   :  { %908 = vmatprep.subr.bf16.mxu1 %v2162_v19  ;;  %v150_v35 = vld [vmem:[#allocation6 + $0x240] sm:$0xff]  ;;  %v2194_v37 = vcombine.high %v142_v32, %v146_v33  ;;  %v2193_v38 = vcombine.low %v142_v32, %v146_v33  ;;  %v2156_v19 = vcombine.high %v103_v12, %v107_v13  ;;  %v2163_v24 = vcombine.low %v111_v16, %v115_v18  ;;  %v92_v12 = vld [vmem:[#allocation6 + $0x70] sm:$0xff] }
  0x5d   :  { %v154_v36 = vld [vmem:[#allocation6 + $0x260] sm:$0xff]  ;;  %v2421_v13 = vld [vmem:[#allocation9 + $0x24] ss:$8 sps:$4 sm:$0xff]  }
  0x5e   :  { %v158_v39 = vld [vmem:[#allocation6 + $0x280] sm:$0xff]  ;;  %v2202_v41 = vcombine.high %v150_v35, %v154_v36  ;;  %v2201_v42 = vcombine.low %v150_v35, %v154_v36  ;;  %v147_v35 = vld [vmem:[#allocation6 + $0x228] sm:$0xff] }
  0x5f   :  { %909 = vmatpush1.bf16.msra.mxu1 %v2161_v22  ;;  %v162_v40 = vld [vmem:[#allocation6 + $0x2a0] sm:$0xff]  ;;  %v2164_v22 = vcombine.high %v111_v16, %v115_v18  ;;  %v96_v18 = vld [vmem:[#allocation6 + $0x90] sm:$0xff] }
  0x60   :  { %910 = vmatprep.subr.bf16.mxu1 %v2170_v23  ;;  %v166_v43 = vld [vmem:[#allocation6 + $0x2c0] sm:$0xff]  ;;  %v2210_v45 = vcombine.high %v158_v39, %v162_v40  ;;  %v2209_v46 = vcombine.low %v158_v39, %v162_v40  ;;  %v123_v23 = vld [vmem:[#allocation6 + $0x168] sm:$0xff] }
  0x61   :  { %v170_v44 = vld [vmem:[#allocation6 + $0x2e0] sm:$0xff]  ;;  %v2172_v25 = vcombine.high %v119_v21, %v123_v23  ;;  %v2171_v28 = vcombine.low %v119_v21, %v123_v23  ;;  %v155_v39 = vld [vmem:[#allocation6 + $0x268] sm:$0xff] }
  0x62   :  { %v174_v47 = vld [vmem:[#allocation6 + $0x300] sm:$0xff]  ;;  %v2218_v49 = vcombine.high %v166_v43, %v170_v44  ;;  %v2217_v50 = vcombine.low %v166_v43, %v170_v44  ;;  %v163_v43 = vld [vmem:[#allocation6 + $0x2a8] sm:$0xff] }
  0x63   :  { %911 = vmatpush1.bf16.msra.mxu1 %v2169_v26  ;;  %v178_v48 = vld [vmem:[#allocation6 + $0x320] sm:$0xff]  ;;  %v127_v26 = vld [vmem:[#allocation6 + $0x188] sm:$0xff] }
  0x64   :  { %912 = vmatprep.subr.bf16.mxu1 %v2178_v27  ;;  %v182_v51 = vld [vmem:[#allocation6 + $0x340] sm:$0xff]  ;;  %v2226_v53 = vcombine.high %v174_v47, %v178_v48  ;;  %v2225_v54 = vcombine.low %v174_v47, %v178_v48  ;;  %v131_v27 = vld [vmem:[#allocation6 + $0x1a8] sm:$0xff] }
  0x65   :  { %v186_v52 = vld [vmem:[#allocation6 + $0x360] sm:$0xff]  ;;  %v2180_v29 = vcombine.high %v127_v26, %v131_v27  ;;  %v2179_v32 = vcombine.low %v127_v26, %v131_v27  ;;  %v171_v47 = vld [vmem:[#allocation6 + $0x2e8] sm:$0xff]  ;;  %v108_v26 = vld [vmem:[#allocation6 + $0xf0] sm:$0xff] }
  0x66   :  { %v190_v55 = vld [vmem:[#allocation6 + $0x380] sm:$0xff]  ;;  %v2234_v57 = vcombine.high %v182_v51, %v186_v52  ;;  %v2233_v58 = vcombine.low %v182_v51, %v186_v52  ;;  %v179_v51 = vld [vmem:[#allocation6 + $0x328] sm:$0xff] }
  0x67   :  { %913 = vmatpush1.bf16.msra.mxu1 %v2177_v30  ;;  %v194_v56 = vld [vmem:[#allocation6 + $0x3a0] sm:$0xff]  ;;  %v135_v30 = vld [vmem:[#allocation6 + $0x1c8] sm:$0xff] }
  0x68   :  { %914 = vmatprep.subr.bf16.mxu1 %v2186_v31  ;;  %v198_v59 = vld [vmem:[#allocation6 + $0x3c0] sm:$0xff]  ;;  %v2242_v61 = vcombine.high %v190_v55, %v194_v56  ;;  %v2241_v62 = vcombine.low %v190_v55, %v194_v56  ;;  %v139_v31 = vld [vmem:[#allocation6 + $0x1e8] sm:$0xff] }
  0x69   :  { %v202_v60 = vld [vmem:[#allocation6 + $0x3e0] sm:$0xff]  ;;  %v2188_v33 = vcombine.high %v135_v30, %v139_v31  ;;  %v2187_v36 = vcombine.low %v135_v30, %v139_v31  ;;  %v187_v55 = vld [vmem:[#allocation6 + $0x368] sm:$0xff]  ;;  %v112_v31 = vld [vmem:[#allocation6 + $0x110] sm:$0xff] }
  0x6a   :  { %v2250_v1 = vcombine.high %v198_v59, %v202_v60  ;;  %v2249_v2 = vcombine.low %v198_v59, %v202_v60  ;;  %v195_v59 = vld [vmem:[#allocation6 + $0x3a8] sm:$0xff]  ;;  %v2420_v9 = vld [vmem:[#allocation9 + $0x10] ss:$8 sps:$4 sm:$0xff]  }
  0x6b   :  { %915 = vmatpush1.bf16.msra.mxu1 %v2185_v34  ;;  %v143_v34 = vld [vmem:[#allocation6 + $0x208] sm:$0xff]  ;;  %v2426_v21 = vld [vmem:[#allocation9 + $0x30] ss:$8 sps:$4 sm:$0xff]  }
  0x6c   :  { %916 = vmatprep.subr.bf16.mxu1 %v2194_v37  ;;  %v2196_v37 = vcombine.high %v143_v34, %v147_v35  ;;  %v2195_v40 = vcombine.low %v143_v34, %v147_v35  ;;  %v2429_v27 = vld [vmem:[#allocation9 + $0x40] ss:$8 sps:$4 sm:$0xff]   ;;  %v2433_v34 = vld [vmem:[#allocation9 + $0x64] ss:$8 sps:$4 sm:$0xff]  }
  0x6f   :  { %917 = vmatpush1.bf16.msra.mxu1 %v2193_v38  ;;  %v151_v38 = vld [vmem:[#allocation6 + $0x248] sm:$0xff] }
  0x70   :  { %918 = vmatprep.subr.bf16.mxu1 %v2202_v41  ;;  %v2204_v41 = vcombine.high %v151_v38, %v155_v39  ;;  %v2203_v44 = vcombine.low %v151_v38, %v155_v39  ;;  %v124_v38 = vld [vmem:[#allocation6 + $0x170] sm:$0xff] }
  0x71   :  { %v2435_v39 = vld [vmem:[#allocation9 + $0x60] ss:$8 sps:$4 sm:$0xff]  }
  0x73   :  { %919 = vmatpush1.bf16.msra.mxu1 %v2201_v42  ;;  %v159_v42 = vld [vmem:[#allocation6 + $0x288] sm:$0xff] }
  0x74   :  { %920 = vmatprep.subr.bf16.mxu1 %v2210_v45  ;;  %v2212_v45 = vcombine.high %v159_v42, %v163_v43  ;;  %v2211_v48 = vcombine.low %v159_v42, %v163_v43  ;;  %v128_v43 = vld [vmem:[#allocation6 + $0x190] sm:$0xff] }
  0x77   :  { %921 = vmatpush1.bf16.msra.mxu1 %v2209_v46  ;;  %v167_v46 = vld [vmem:[#allocation6 + $0x2c8] sm:$0xff] }
  0x78   :  { %922 = vmatprep.subr.bf16.mxu1 %v2218_v49  ;;  %v2220_v49 = vcombine.high %v167_v46, %v171_v47  ;;  %v2219_v52 = vcombine.low %v167_v46, %v171_v47  ;;  %v2438_v46 = vld [vmem:[#allocation9 + $0x70] ss:$8 sps:$4 sm:$0xff]  }
  0x7b   :  { %923 = vmatpush1.bf16.msra.mxu1 %v2217_v50  ;;  %v175_v50 = vld [vmem:[#allocation6 + $0x308] sm:$0xff] }
  0x7c   :  { %924 = vmatprep.subr.bf16.mxu1 %v2226_v53  ;;  %v2228_v53 = vcombine.high %v175_v50, %v179_v51  ;;  %v2227_v56 = vcombine.low %v175_v50, %v179_v51  ;;  %v2439_v50 = vld [vmem:[#allocation9 + $0x84] ss:$8 sps:$4 sm:$0xff]  }
  0x7f   :  { %925 = vmatpush1.bf16.msra.mxu1 %v2225_v54  ;;  %v183_v54 = vld [vmem:[#allocation6 + $0x348] sm:$0xff] }
  0x80   :  { %926 = vmatprep.subr.bf16.mxu1 %v2234_v57  ;;  %v2236_v57 = vcombine.high %v183_v54, %v187_v55  ;;  %v2235_v60 = vcombine.low %v183_v54, %v187_v55  ;;  %v144_v54 = vld [vmem:[#allocation6 + $0x210] sm:$0xff] }
  0x81   :  { %v148_v55 = vld [vmem:[#allocation6 + $0x230] sm:$0xff] }
  0x83   :  { %927 = vmatpush1.bf16.msra.mxu1 %v2233_v58  ;;  %v191_v58 = vld [vmem:[#allocation6 + $0x388] sm:$0xff] }
  0x84   :  { %928 = vmatprep.subr.bf16.mxu1 %v2242_v61  ;;  %v2244_v61 = vcombine.high %v191_v58, %v195_v59 }
  0x87   :  { %929 = vmatpush1.bf16.msra.mxu1 %v2241_v62  ;;  %v199_v62 = vld [vmem:[#allocation6 + $0x3c8] sm:$0xff] }
  0x88   :  { %930 = vmatprep.subr.bf16.mxu1 %v2250_v1  ;;  %v2243_v1 = vcombine.low %v191_v58, %v195_v59  ;;  %v2252_v3 = vcombine.high %v199_v62, %v203_v63  ;;  %v2251_v8 = vcombine.low %v199_v62, %v203_v63  ;;  %v2444_v58 = vld [vmem:[#allocation9 + $0x90] ss:$8 sps:$4 sm:$0xff]   ;;  %v2198_v59 = vcombine.high %v144_v54, %v148_v55  ;;  %v2445_v62 = vld [vmem:[#allocation9 + $0xa4] ss:$8 sps:$4 sm:$0xff]  }
  0x89   :  { %v2197_v63 = vcombine.low %v144_v54, %v148_v55  ;;  %v113_v55 = vld [vmem:[#allocation6 + $0x118] sm:$0xff] }
  0x8b   :  { %931 = vmatpush1.bf16.msra.mxu1 %v2249_v2  ;;  %v2417_v2 = vld [vmem:[#allocation9] ss:$8 sps:$4 sm:$0xff]  }
  0x8c   :  { %943 = vmatprep.subr.bf16.mxu1 %v2132_v6  ;;  %v84_v6 = vld [vmem:[#allocation6 + $0x30] sm:$0xff]  ;;  %1933 = vmatpush1.bf16.msra.mxu0 %v2417_v2  ;;  %v2448_v2 = vld [vmem:[#allocation9 + $0xb4] ss:$8 sps:$4 sm:$0xff]  }
  0x8e   :  { %933 = vmatmul.mubr.bf16.vlgmr.msra.gmra.mrb[0].mxu1 %v2846_v5 }
  0x8f   :  { %944 = vmatpush1.bf16.msra.mxu1 %v2131_v7  ;;  %975 = vmatprep.mubr.bf16.mxu1 %v2843_v17  ;;  %v2418_v7 = vld [vmem:[#allocation9 + $0x14] ss:$8 sps:$4 sm:$0xff]  }
  0x90   :  { %945 = vmatprep.subr.bf16.mxu1 %v2140_v10  ;;  %v2134_v10 = vcombine.high %v80_v4, %v84_v6  ;;  %1934 = vmatprep.subr.bf16.mxu0 %v2418_v7  ;;  %v2451_v7 = vld [vmem:[#allocation9 + $0xc4] ss:$8 sps:$4 sm:$0xff]  }
  0x91   :  { %1935 = vmatpush1.bf16.msra.mxu0 %v2420_v9 }
  0x92   :  { %1936 = vmatprep.subr.bf16.mxu0 %v2421_v13  ;;  %v2454_v13 = vld [vmem:[#allocation9 + $0xd4] ss:$8 sps:$4 sm:$0xff]  }
  0x93   :  { %946 = vmatpush1.bf16.msra.mxu1 %v2139_v11  ;;  %v88_v11 = vld [vmem:[#allocation6 + $0x50] sm:$0xff] }
  0x94   :  { %947 = vmatprep.subr.bf16.mxu1 %v2148_v14  ;;  %v2133_v14 = vcombine.low %v80_v4, %v84_v6  ;;  %v2142_v16 = vcombine.high %v88_v11, %v92_v12  ;;  %v2141_v23 = vcombine.low %v88_v11, %v92_v12  ;;  %v164_v4 = vld [vmem:[#allocation6 + $0x2b0] sm:$0xff]  ;;  %v2450_v6 = vld [vmem:[#allocation9 + $0xb0] ss:$8 sps:$4 sm:$0xff]  }
  0x95   :  { %v172_v11 = vld [vmem:[#allocation6 + $0x2f0] sm:$0xff] }
  0x96   :  { %v2453_v12 = vld [vmem:[#allocation9 + $0xc0] ss:$8 sps:$4 sm:$0xff]  }
  0x97   :  { %948 = vmatpush1.bf16.msra.mxu1 %v2147_v15  ;;  %v2423_v15 = vld [vmem:[#allocation9 + $0x20] ss:$8 sps:$4 sm:$0xff]  }
  0x98   :  { %949 = vmatprep.subr.bf16.mxu1 %v2156_v19  ;;  %v100_v19 = vld [vmem:[#allocation6 + $0xb0] sm:$0xff]  ;;  %1937 = vmatpush1.bf16.msra.mxu0 %v2423_v15 }
  0x9b   :  { %950 = vmatpush1.bf16.msra.mxu1 %v2155_v20  ;;  %v2424_v20 = vld [vmem:[#allocation9 + $0x34] ss:$8 sps:$4 sm:$0xff]  }
  0x9c   :  { %951 = vmatprep.subr.bf16.mxu1 %v2164_v22  ;;  %v2427_v22 = vld [vmem:[#allocation9 + $0x44] ss:$8 sps:$4 sm:$0xff]   ;;  %1938 = vmatprep.subr.bf16.mxu0 %v2424_v20 }
  0x9d   :  { %1939 = vmatpush1.bf16.msra.mxu0 %v2426_v21  ;;  %v2457_v20 = vld [vmem:[#allocation9 + $0xe4] ss:$8 sps:$4 sm:$0xff]  }
  0x9e   :  { %1940 = vmatprep.subr.bf16.mxu0 %v2427_v22 }
  0x9f   :  { %952 = vmatpush1.bf16.msra.mxu1 %v2163_v24  ;;  %v2150_v24 = vcombine.high %v96_v18, %v100_v19 }
  0xa0   :  { %953 = vmatprep.subr.bf16.mxu1 %v2172_v25  ;;  %v104_v25 = vld [vmem:[#allocation6 + $0xd0] sm:$0xff] }
  0xa1   :  { %v2158_v30 = vcombine.high %v104_v25, %v108_v26  ;;  %1941 = vmatpush1.bf16.msra.mxu0 %v2429_v27  ;;  %v2157_v35 = vcombine.low %v104_v25, %v108_v26  ;;  %v2459_v25 = vld [vmem:[#allocation9 + $0xe0] ss:$8 sps:$4 sm:$0xff]   ;;  %v2460_v26 = vld [vmem:[#allocation9 + $0xf4] ss:$8 sps:$4 sm:$0xff]  }
  0xa3   :  { %954 = vmatpush1.bf16.msra.mxu1 %v2171_v28  ;;  %v2430_v28 = vld [vmem:[#allocation9 + $0x54] ss:$8 sps:$4 sm:$0xff]  }
  0xa4   :  { %955 = vmatprep.subr.bf16.mxu1 %v2180_v29  ;;  %v2149_v29 = vcombine.low %v96_v18, %v100_v19  ;;  %1942 = vmatprep.subr.bf16.mxu0 %v2430_v28  ;;  %v180_v18 = vld [vmem:[#allocation6 + $0x330] sm:$0xff]  ;;  %v2456_v19 = vld [vmem:[#allocation9 + $0xd0] ss:$8 sps:$4 sm:$0xff]  }
  0xa7   :  { %956 = vmatpush1.bf16.msra.mxu1 %v2179_v32  ;;  %v116_v32 = vld [vmem:[#allocation6 + $0x130] sm:$0xff] }
  0xa8   :  { %957 = vmatprep.subr.bf16.mxu1 %v2188_v33  ;;  %v2432_v33 = vld [vmem:[#allocation9 + $0x50] ss:$8 sps:$4 sm:$0xff]  }
  0xa9   :  { %1943 = vmatpush1.bf16.msra.mxu0 %v2432_v33 }
  0xaa   :  { %1944 = vmatprep.subr.bf16.mxu0 %v2433_v34  ;;  %v200_v34 = vld [vmem:[#allocation6 + $0x3d0] sm:$0xff] }
  0xab   :  { %958 = vmatpush1.bf16.msra.mxu1 %v2187_v36  ;;  %v2166_v36 = vcombine.high %v112_v31, %v116_v32 }
  0xac   :  { %959 = vmatprep.subr.bf16.mxu1 %v2196_v37  ;;  %v120_v37 = vld [vmem:[#allocation6 + $0x150] sm:$0xff] }
  0xad   :  { %v2174_v42 = vcombine.high %v120_v37, %v124_v38  ;;  %1945 = vmatpush1.bf16.msra.mxu0 %v2435_v39  ;;  %v81_v39 = vld [vmem:[#allocation6 + $0x18] sm:$0xff] }
  0xaf   :  { %960 = vmatpush1.bf16.msra.mxu1 %v2195_v40  ;;  %v2436_v40 = vld [vmem:[#allocation9 + $0x74] ss:$8 sps:$4 sm:$0xff]  }
  0xb0   :  { %961 = vmatprep.subr.bf16.mxu1 %v2204_v41  ;;  %v2165_v41 = vcombine.low %v112_v31, %v116_v32  ;;  %1946 = vmatprep.subr.bf16.mxu0 %v2436_v40  ;;  %v2462_v31 = vld [vmem:[#allocation9 + $0xf0] ss:$8 sps:$4 sm:$0xff]  }
  0xb1   :  { %1947 = vmatpush1.bf16.msra.mxu0 %v2438_v46  ;;  %v85_v40 = vld [vmem:[#allocation6 + $0x38] sm:$0xff] }
  0xb2   :  { %1948 = vmatprep.subr.bf16.mxu0 %v2439_v50 }
  0xb3   :  { %962 = vmatpush1.bf16.msra.mxu1 %v2203_v44  ;;  %v132_v44 = vld [vmem:[#allocation6 + $0x1b0] sm:$0xff] }
  0xb4   :  { %963 = vmatprep.subr.bf16.mxu1 %v2212_v45  ;;  %v2173_v45 = vcombine.low %v120_v37, %v124_v38  ;;  %v2182_v47 = vcombine.high %v128_v43, %v132_v44  ;;  %v2181_v51 = vcombine.low %v128_v43, %v132_v44  ;;  %v89_v43 = vld [vmem:[#allocation6 + $0x58] sm:$0xff] }
  0xb5   :  { %v93_v44 = vld [vmem:[#allocation6 + $0x78] sm:$0xff] }
  0xb6   :  { %v2144_v46 = vcombine.high %v89_v43, %v93_v44 }
  0xb7   :  { %964 = vmatpush1.bf16.msra.mxu1 %v2211_v48  ;;  %v136_v48 = vld [vmem:[#allocation6 + $0x1d0] sm:$0xff] }
  0xb8   :  { %965 = vmatprep.subr.bf16.mxu1 %v2220_v49  ;;  %v140_v49 = vld [vmem:[#allocation6 + $0x1f0] sm:$0xff] }
  0xbb   :  { %966 = vmatpush1.bf16.msra.mxu1 %v2219_v52  ;;  %v2441_v52 = vld [vmem:[#allocation9 + $0x80] ss:$8 sps:$4 sm:$0xff]  }
  0xbc   :  { %967 = vmatprep.subr.bf16.mxu1 %v2228_v53  ;;  %v2190_v53 = vcombine.high %v136_v48, %v140_v49  ;;  %1949 = vmatpush1.bf16.msra.mxu0 %v2441_v52  ;;  %v109_v52 = vld [vmem:[#allocation6 + $0xf8] sm:$0xff] }
  0xbf   :  { %968 = vmatpush1.bf16.msra.mxu1 %v2227_v56  ;;  %v2442_v56 = vld [vmem:[#allocation9 + $0x94] ss:$8 sps:$4 sm:$0xff]  }
  0xc0   :  { %969 = vmatprep.subr.bf16.mxu1 %v2236_v57  ;;  %v2189_v57 = vcombine.low %v136_v48, %v140_v49  ;;  %1950 = vmatprep.subr.bf16.mxu0 %v2442_v56  ;;  %v101_v48 = vld [vmem:[#allocation6 + $0xb8] sm:$0xff]  ;;  %v2143_v49 = vcombine.low %v89_v43, %v93_v44  ;;  %v2858_v44 = vld [vmem:[#allocation8] sm:$0xff] }
  0xc1   :  { %1951 = vmatpush1.bf16.msra.mxu0 %v2444_v58  ;;  %v117_v56 = vld [vmem:[#allocation6 + $0x138] sm:$0xff] }
  0xc2   :  { %1952 = vmatprep.subr.bf16.mxu0 %v2445_v62  ;;  %v2168_v58 = vcombine.high %v113_v55, %v117_v56  ;;  %v129_v62 = vld [vmem:[#allocation6 + $0x198] sm:$0xff] }
  0xc3   :  { %970 = vmatpush1.bf16.msra.mxu1 %v2235_v60  ;;  %v152_v60 = vld [vmem:[#allocation6 + $0x250] sm:$0xff] }
  0xc4   :  { %971 = vmatprep.subr.bf16.mxu1 %v2244_v61  ;;  %v156_v61 = vld [vmem:[#allocation6 + $0x270] sm:$0xff] }
  0xc5   :  { %1953 = vmatpush1.bf16.msra.mxu0 %v2447_v0 }
  0xc6   :  { %1954 = vmatprep.subr.bf16.mxu0 %v2448_v2  ;;  %v137_v2 = vld [vmem:[#allocation6 + $0x1d8] sm:$0xff] }
  0xc7   :  { %972 = vmatpush1.bf16.msra.mxu1 %v2243_v1  ;;  %v2206_v1 = vcombine.high %v152_v60, %v156_v61 }
  0xc8   :  { %973 = vmatprep.subr.bf16.mxu1 %v2252_v3  ;;  %v160_v3 = vld [vmem:[#allocation6 + $0x290] sm:$0xff] }
  0xc9   :  { %v2214_v9 = vcombine.high %v160_v3, %v164_v4  ;;  %1955 = vmatpush1.bf16.msra.mxu0 %v2450_v6 }
  0xca   :  { %1956 = vmatprep.subr.bf16.mxu0 %v2451_v7  ;;  %v145_v7 = vld [vmem:[#allocation6 + $0x218] sm:$0xff] }
  0xcb   :  { %974 = vmatpush1.bf16.msra.mxu1 %v2251_v8  ;;  %v2205_v8 = vcombine.low %v152_v60, %v156_v61  ;;  %v125_v60 = vld [vmem:[#allocation6 + $0x178] sm:$0xff]  ;;  %v2167_v61 = vcombine.low %v113_v55, %v117_v56 }
  0xcc   :  { %986 = vmatprep.subr.bf16.mxu1 %v2134_v10  ;;  %v168_v10 = vld [vmem:[#allocation6 + $0x2d0] sm:$0xff] }
  0xcd   :  { %v2222_v15 = vcombine.high %v168_v10, %v172_v11  ;;  %1957 = vmatpush1.bf16.msra.mxu0 %v2453_v12  ;;  %v2221_v21 = vcombine.low %v168_v10, %v172_v11  ;;  %v153_v11 = vld [vmem:[#allocation6 + $0x258] sm:$0xff] }
  0xce   :  { %976 = vmatmul.mubr.bf16.vlgmr.msra.gmra.mrb[4].mxu1 %v2846_v5  ;;  %1958 = vmatprep.subr.bf16.mxu0 %v2454_v13  ;;  %v157_v12 = vld [vmem:[#allocation6 + $0x278] sm:$0xff] }
  0xcf   :  { %987 = vmatpush1.bf16.msra.mxu1 %v2133_v14  ;;  %1018 = vmatprep.mubr.bf16.mxu1 %v2843_v17  ;;  %v2213_v14 = vcombine.low %v160_v3, %v164_v4  ;;  %v141_v3 = vld [vmem:[#allocation6 + $0x1f8] sm:$0xff] }
  0xd0   :  { %988 = vmatprep.subr.bf16.mxu1 %v2142_v16  ;;  %v176_v16 = vld [vmem:[#allocation6 + $0x310] sm:$0xff]  ;;  %v2192_v6 = vcombine.high %v137_v2, %v141_v3 }
  0xd1   :  { %v2230_v22 = vcombine.high %v176_v16, %v180_v18  ;;  %1959 = vmatpush1.bf16.msra.mxu0 %v2456_v19  ;;  %v2229_v27 = vcombine.low %v176_v16, %v180_v18  ;;  %v165_v16 = vld [vmem:[#allocation6 + $0x2b8] sm:$0xff]  ;;  %v2207_v18 = vcombine.low %v153_v11, %v157_v12 }
  0xd2   :  { %1960 = vmatprep.subr.bf16.mxu0 %v2457_v20  ;;  %v169_v20 = vld [vmem:[#allocation6 + $0x2d8] sm:$0xff] }
  0xd3   :  { %989 = vmatpush1.bf16.msra.mxu1 %v2141_v23  ;;  %v184_v23 = vld [vmem:[#allocation6 + $0x350] sm:$0xff] }
  0xd4   :  { %990 = vmatprep.subr.bf16.mxu1 %v2150_v24  ;;  %v188_v24 = vld [vmem:[#allocation6 + $0x370] sm:$0xff] }
  0xd5   :  { %v2238_v28 = vcombine.high %v184_v23, %v188_v24  ;;  %1961 = vmatpush1.bf16.msra.mxu0 %v2459_v25  ;;  %v2237_v32 = vcombine.low %v184_v23, %v188_v24  ;;  %v177_v24 = vld [vmem:[#allocation6 + $0x318] sm:$0xff] }
  0xd6   :  { %1962 = vmatprep.subr.bf16.mxu0 %v2460_v26  ;;  %v181_v25 = vld [vmem:[#allocation6 + $0x338] sm:$0xff] }
  0xd7   :  { %991 = vmatpush1.bf16.msra.mxu1 %v2149_v29  ;;  %v192_v29 = vld [vmem:[#allocation6 + $0x390] sm:$0xff] }
  0xd8   :  { %992 = vmatprep.subr.bf16.mxu1 %v2158_v30  ;;  %v196_v30 = vld [vmem:[#allocation6 + $0x3b0] sm:$0xff] }
  0xd9   :  { %v2246_v33 = vcombine.high %v192_v29, %v196_v30  ;;  %1963 = vmatpush1.bf16.msra.mxu0 %v2462_v31  ;;  %v2245_v37 = vcombine.low %v192_v29, %v196_v30  ;;  %v189_v29 = vld [vmem:[#allocation6 + $0x378] sm:$0xff]  ;;  %v2231_v30 = vcombine.low %v177_v24, %v181_v25 }
  0xdb   :  { %993 = vmatpush1.bf16.msra.mxu1 %v2157_v35  ;;  %v204_v35 = vld [vmem:[#allocation6 + $0x3f0] sm:$0xff] }
  0xdc   :  { %994 = vmatprep.subr.bf16.mxu1 %v2166_v36  ;;  %v2465_v36 = vld [vmem:[#allocation9 + $0x104] ss:$8 sps:$4 sm:$0xff]   ;;  %v2254_v38 = vcombine.high %v200_v34, %v204_v35 }
  0xdd   :  { %1975 = vmatprep.subr.bf16.mxu0 %v2465_v36  ;;  %v201_v36 = vld [vmem:[#allocation6 + $0x3d8] sm:$0xff] }
  0xdf   :  { %995 = vmatpush1.bf16.msra.mxu1 %v2165_v41  ;;  %v2253_v41 = vcombine.low %v200_v34, %v204_v35 }
  0xe0   :  { %996 = vmatprep.subr.bf16.mxu1 %v2174_v42  ;;  %v2136_v42 = vcombine.high %v81_v39, %v85_v40 }
  0xe3   :  { %997 = vmatpush1.bf16.msra.mxu1 %v2173_v45  ;;  %v2135_v45 = vcombine.low %v81_v39, %v85_v40 }
  0xe4   :  { %998 = vmatprep.subr.bf16.mxu1 %v2182_v47  ;;  %v97_v47 = vld [vmem:[#allocation6 + $0x98] sm:$0xff] }
  0xe5   :  { %v2152_v50 = vcombine.high %v97_v47, %v101_v48 }
  0xe7   :  { %999 = vmatpush1.bf16.msra.mxu1 %v2181_v51  ;;  %v105_v51 = vld [vmem:[#allocation6 + $0xd8] sm:$0xff] }
  0xe8   :  { %1000 = vmatprep.subr.bf16.mxu1 %v2190_v53  ;;  %v2151_v53 = vcombine.low %v97_v47, %v101_v48  ;;  %v2160_v54 = vcombine.high %v105_v51, %v109_v52 }
  0xeb   :  { %1001 = vmatpush1.bf16.msra.mxu1 %v2189_v57  ;;  %v2159_v57 = vcombine.low %v105_v51, %v109_v52 }
  0xec   :  { %1002 = vmatprep.subr.bf16.mxu1 %v2198_v59  ;;  %v121_v59 = vld [vmem:[#allocation6 + $0x158] sm:$0xff] }
  0xed   :  { %v2175_v0 = vcombine.low %v121_v59, %v125_v60 }
  0xef   :  { %1003 = vmatpush1.bf16.msra.mxu1 %v2197_v63  ;;  %v133_v63 = vld [vmem:[#allocation6 + $0x1b8] sm:$0xff] }
  0xf0   :  { %1004 = vmatprep.subr.bf16.mxu1 %v2206_v1  ;;  %v2184_v1 = vcombine.high %v129_v62, %v133_v63  ;;  %v2183_v4 = vcombine.low %v129_v62, %v133_v63 }
  0xf3   :  { %1005 = vmatpush1.bf16.msra.mxu1 %v2205_v8  ;;  %v149_v8 = vld [vmem:[#allocation6 + $0x238] sm:$0xff] }
  0xf4   :  { %1006 = vmatprep.subr.bf16.mxu1 %v2214_v9  ;;  %v2191_v9 = vcombine.low %v137_v2, %v141_v3  ;;  %v2200_v10 = vcombine.high %v145_v7, %v149_v8  ;;  %v2199_v13 = vcombine.low %v145_v7, %v149_v8 }
  0xf7   :  { %1007 = vmatpush1.bf16.msra.mxu1 %v2213_v14  ;;  %v2208_v14 = vcombine.high %v153_v11, %v157_v12  ;;  %v2468_v12 = vld [vmem:[#allocation9 + $0x114] ss:$8 sps:$4 sm:$0xff]  }
  0xf8   :  { %1008 = vmatprep.subr.bf16.mxu1 %v2222_v15  ;;  %v161_v15 = vld [vmem:[#allocation6 + $0x298] sm:$0xff] }
  0xf9   :  { %v2216_v19 = vcombine.high %v161_v15, %v165_v16 }
  0xfb   :  { %1009 = vmatpush1.bf16.msra.mxu1 %v2221_v21  ;;  %v173_v21 = vld [vmem:[#allocation6 + $0x2f8] sm:$0xff] }
  0xfc   :  { %1010 = vmatprep.subr.bf16.mxu1 %v2230_v22  ;;  %v2215_v22 = vcombine.low %v161_v15, %v165_v16  ;;  %v2224_v23 = vcombine.high %v169_v20, %v173_v21  ;;  %v2223_v26 = vcombine.low %v169_v20, %v173_v21  ;;  %v2469_v15 = vld [vmem:[#allocation9 + $0x120] ss:$8 sps:$4 sm:$0xff]   ;;  %v2474_v16 = vld [vmem:[#allocation9 + $0x134] ss:$8 sps:$4 sm:$0xff]  }
  0xfd   :  { %v2475_v20 = vld [vmem:[#allocation9 + $0x140] ss:$8 sps:$4 sm:$0xff]   ;;  %v2480_v21 = vld [vmem:[#allocation9 + $0x154] ss:$8 sps:$4 sm:$0xff]  }
  0xff   :  { %1011 = vmatpush1.bf16.msra.mxu1 %v2229_v27  ;;  %v2232_v27 = vcombine.high %v177_v24, %v181_v25  ;;  %v2481_v24 = vld [vmem:[#allocation9 + $0x160] ss:$8 sps:$4 sm:$0xff]   ;;  %v2486_v25 = vld [vmem:[#allocation9 + $0x174] ss:$8 sps:$4 sm:$0xff]  }
 0x100   :  { %1012 = vmatprep.subr.bf16.mxu1 %v2238_v28  ;;  %v185_v28 = vld [vmem:[#allocation6 + $0x358] sm:$0xff] }
 0x101   :  { %v2240_v31 = vcombine.high %v185_v28, %v189_v29  ;;  %v2239_v34 = vcombine.low %v185_v28, %v189_v29 }
 0x103   :  { %1013 = vmatpush1.bf16.msra.mxu1 %v2237_v32  ;;  %v193_v32 = vld [vmem:[#allocation6 + $0x398] sm:$0xff] }
 0x104   :  { %1014 = vmatprep.subr.bf16.mxu1 %v2246_v33  ;;  %v197_v33 = vld [vmem:[#allocation6 + $0x3b8] sm:$0xff] }
 0x105   :  { %v2248_v35 = vcombine.high %v193_v32, %v197_v33 }
 0x107   :  { %1015 = vmatpush1.bf16.msra.mxu1 %v2245_v37  ;;  %v205_v37 = vld [vmem:[#allocation6 + $0x3f8] sm:$0xff] }
 0x108   :  { %1016 = vmatprep.subr.bf16.mxu1 %v2254_v38  ;;  %v2247_v38 = vcombine.low %v193_v32, %v197_v33  ;;  %v2256_v39 = vcombine.high %v201_v36, %v205_v37  ;;  %v2255_v40 = vcombine.low %v201_v36, %v205_v37  ;;  %v2487_v33 = vld [vmem:[#allocation9 + $0x180] ss:$8 sps:$4 sm:$0xff]   ;;  %v2492_v36 = vld [vmem:[#allocation9 + $0x194] ss:$8 sps:$4 sm:$0xff]  }
 0x10b   :  { %1017 = vmatpush1.bf16.msra.mxu1 %v2253_v41  ;;  %v210_v41 = vlaneseq }
 0x10c   :  { %1029 = vmatprep.subr.bf16.mxu1 %v2136_v42 }
 0x10d   :  { %v2855_v42 = vshrl.u32 %v210_v41, 7 }
 0x10e   :  { %1019 = vmatmul.mubr.bf16.vlgmr.msra.gmra.mrb[8].mxu1 %v2846_v5 }
 0x10f   :  { %1030 = vmatpush1.bf16.msra.mxu1 %v2135_v45  ;;  %1061 = vmatprep.mubr.bf16.mxu1 %v2843_v17  ;;  %v2176_v17 = vcombine.high %v121_v59, %v125_v60  ;;  %v212_v43 = vsub.s32 0, %v2855_v42  ;;  %v216_v45 = vsub.s32 1, %v2855_v42  ;;  %v224_v28 = vsub.s32 3, %v2855_v42 }
 0x110   :  { %1031 = vmatprep.subr.bf16.mxu1 %v2144_v46 }
 0x111   :  { %v213_v46 = vrot.slane %v2858_v44, %v212_v43  ;;  %v217_v48 = vrot.slane %v2858_v44, %v216_v45  ;;  %v225_v32 = vrot.slane %v2858_v44, %v224_v28  ;;  %v2529_v28 = vld [vmem:[#allocation9 + $0x260] ss:$8 sps:$4 sm:$0xff]  }
 0x113   :  { %1032 = vmatpush1.bf16.msra.mxu1 %v2143_v49 }
 0x114   :  { %1033 = vmatprep.subr.bf16.mxu1 %v2152_v50 }
 0x117   :  { %1034 = vmatpush1.bf16.msra.mxu1 %v2151_v53 }
 0x118   :  { %1035 = vmatprep.subr.bf16.mxu1 %v2160_v54 }
 0x11b   :  { %1036 = vmatpush1.bf16.msra.mxu1 %v2159_v57 }
 0x11c   :  { %1037 = vmatprep.subr.bf16.mxu1 %v2168_v58 }
 0x11f   :  { %1038 = vmatpush1.bf16.msra.mxu1 %v2167_v61 }
 0x120   :  { %1039 = vmatprep.subr.bf16.mxu1 %v2176_v17 }
 0x123   :  { %1040 = vmatpush1.bf16.msra.mxu1 %v2175_v0 }
 0x124   :  { %1041 = vmatprep.subr.bf16.mxu1 %v2184_v1 }
 0x127   :  { %1042 = vmatpush1.bf16.msra.mxu1 %v2183_v4 }
 0x128   :  { %1043 = vmatprep.subr.bf16.mxu1 %v2192_v6 }
 0x12b   :  { %1044 = vmatpush1.bf16.msra.mxu1 %v2191_v9 }
 0x12c   :  { %1045 = vmatprep.subr.bf16.mxu1 %v2200_v10  ;;  %v2463_v10 = vld [vmem:[#allocation9 + $0x100] ss:$8 sps:$4 sm:$0xff]  }
 0x12f   :  { %1046 = vmatpush1.bf16.msra.mxu1 %v2199_v13  ;;  %v2466_v13 = vld [vmem:[#allocation9 + $0x110] ss:$8 sps:$4 sm:$0xff]  }
 0x130   :  { %1047 = vmatprep.subr.bf16.mxu1 %v2208_v14  ;;  %v2471_v14 = vld [vmem:[#allocation9 + $0x124] ss:$8 sps:$4 sm:$0xff]  }
 0x133   :  { %1048 = vmatpush1.bf16.msra.mxu1 %v2207_v18  ;;  %v2472_v18 = vld [vmem:[#allocation9 + $0x130] ss:$8 sps:$4 sm:$0xff]  }
 0x134   :  { %1049 = vmatprep.subr.bf16.mxu1 %v2216_v19  ;;  %v2477_v19 = vld [vmem:[#allocation9 + $0x144] ss:$8 sps:$4 sm:$0xff]  }
 0x137   :  { %1050 = vmatpush1.bf16.msra.mxu1 %v2215_v22  ;;  %v2478_v22 = vld [vmem:[#allocation9 + $0x150] ss:$8 sps:$4 sm:$0xff]  }
 0x138   :  { %1051 = vmatprep.subr.bf16.mxu1 %v2224_v23  ;;  %v2483_v23 = vld [vmem:[#allocation9 + $0x164] ss:$8 sps:$4 sm:$0xff]  }
 0x13b   :  { %1052 = vmatpush1.bf16.msra.mxu1 %v2223_v26  ;;  %v220_v26 = vsub.s32 2, %v2855_v42 }
 0x13c   :  { %1053 = vmatprep.subr.bf16.mxu1 %v2232_v27  ;;  %v2484_v27 = vld [vmem:[#allocation9 + $0x170] ss:$8 sps:$4 sm:$0xff]  }
 0x13d   :  { %v221_v29 = vrot.slane %v2858_v44, %v220_v26  ;;  %v2526_v26 = vld [vmem:[#allocation9 + $0x250] ss:$8 sps:$4 sm:$0xff]  }
 0x13f   :  { %1054 = vmatpush1.bf16.msra.mxu1 %v2231_v30  ;;  %v2489_v30 = vld [vmem:[#allocation9 + $0x184] ss:$8 sps:$4 sm:$0xff]  }
 0x140   :  { %1055 = vmatprep.subr.bf16.mxu1 %v2240_v31 }
 0x143   :  { %1056 = vmatpush1.bf16.msra.mxu1 %v2239_v34 }
 0x144   :  { %1057 = vmatprep.subr.bf16.mxu1 %v2248_v35 }
 0x147   :  { %1058 = vmatpush1.bf16.msra.mxu1 %v2247_v38 }
 0x148   :  { %1059 = vmatprep.subr.bf16.mxu1 %v2256_v39 }
 0x14b   :  { %1060 = vmatpush1.bf16.msra.mxu1 %v2255_v40 }
 0x14e   :  { %1062 = vmatmul.mubr.bf16.vlgmr.msra.gmra.mrb[12].mxu1 %v2846_v5 }
 0x161   :  { %v934_v47 = vpop.f32.mrb[0].mxu1 }
 0x162   :  { %v935_v49 = vadd.f32 %v934_v47, %v213_v46  ;;  %v936_v5 = vpop.f32.mrb[1].mxu1 }
 0x163   :  { %v938_v50 = vpop.f32.mrb[2].mxu1  ;;  %v937_v53 = vadd.f32 %v936_v5, %v217_v48 }
 0x164   :  { %v939_v51 = vadd.f32 %v938_v50, %v213_v46  ;;  %v940_v52 = vpop.f32.mrb[3].mxu1  ;;  %v2490_v46 = vld [vmem:[#allocation9 + $0x190] ss:$8 sps:$4 sm:$0xff]  }
 0x165   :  { %v941_v54 = vadd.f32 %v940_v52, %v217_v48  ;;  %v2495_v48 = vld [vmem:[#allocation9 + $0x1a4] ss:$8 sps:$4 sm:$0xff]  }
 0x166   :  { %v1072_v55 = vpack.c.bf16 %v939_v51, %v935_v49  ;;  %v2493_v51 = vld [vmem:[#allocation9 + $0x1a0] ss:$8 sps:$4 sm:$0xff]  }
 0x167   :  { %v1073_v56 = vpack.c.bf16 %v941_v54, %v937_v53  ;;  %v2498_v53 = vld [vmem:[#allocation9 + $0x1b4] ss:$8 sps:$4 sm:$0xff]  }
 0x168   :  { %v1080_v57 = vmul.bf16 %v1072_v55, %v1072_v55  ;;  %v1120_v8 = vmul.bf16 1056980736, %v1072_v55 }
 0x169   :  { %v1081_v58 = vmul.bf16 %v1073_v56, %v1073_v56  ;;  %v1121_v6 = vmul.bf16 1056980736, %v1073_v56 }
 0x16a   :  { %v1088_v59 = vmul.bf16 %v1080_v57, %v1072_v55  ;;  %v2496_v57 = vld [vmem:[#allocation9 + $0x1b0] ss:$8 sps:$4 sm:$0xff]  }
 0x16b   :  { %v1089_v60 = vmul.bf16 %v1081_v58, %v1073_v56 }
 0x16c   :  { %v1096_v61 = vmul.bf16 1027030327, %v1088_v59  ;;  %v2501_v59 = vld [vmem:[#allocation9 + $0x1c4] ss:$8 sps:$4 sm:$0xff]  }
 0x16d   :  { %v1097_v17 = vmul.bf16 1027030327, %v1089_v60 }
 0x16e   :  { %v1104_v62 = vadd.bf16 %v1096_v61, %v1072_v55 }
 0x16f   :  { %v1105_v63 = vadd.bf16 %v1097_v17, %v1073_v56  ;;  %v2499_v17 = vld [vmem:[#allocation9 + $0x1c0] ss:$8 sps:$4 sm:$0xff]  }
 0x170   :  { %v1112_v0 = vmul.bf16 1061961548, %v1104_v62 }
 0x171   :  { %v1113_v1 = vmul.bf16 1061961548, %v1105_v63  ;;  %v2504_v63 = vld [vmem:[#allocation9 + $0x1d4] ss:$8 sps:$4 sm:$0xff]  }
 0x172   :  { %2607 = vtanh.bf16 %v1112_v0  ;;  %v2502_v0 = vld [vmem:[#allocation9 + $0x1d0] ss:$8 sps:$4 sm:$0xff]  }
 0x173   :  { %2609 = vtanh.bf16 %v1113_v1  ;;  %v2507_v1 = vld [vmem:[#allocation9 + $0x1e4] ss:$8 sps:$4 sm:$0xff]  }
 0x17d   :  { %v2608_v2 = vpop.eup %2607 }
 0x17e   :  { %v2610_v3 = vpop.eup %2609  ;;  %v1136_v4 = vadd.bf16 1065369472, %v2608_v2  ;;  %v2505_v2 = vld [vmem:[#allocation9 + $0x1e0] ss:$8 sps:$4 sm:$0xff]  }
 0x17f   :  { %v1137_v7 = vadd.bf16 1065369472, %v2610_v3  ;;  %v2510_v3 = vld [vmem:[#allocation9 + $0x1f4] ss:$8 sps:$4 sm:$0xff]  }
 0x180   :  { %v1144_v11 = vmul.bf16 %v1136_v4, %v1120_v8 }
 0x181   :  { %v1145_v9 = vmul.bf16 %v1137_v7, %v1121_v6  ;;  %v2508_v6 = vld [vmem:[#allocation9 + $0x1f0] ss:$8 sps:$4 sm:$0xff]  }
 0x183   :  { %1964 = vmatprep.mubr.bf16.mxu0 %v1145_v9  ;;  %v2513_v9 = vld [vmem:[#allocation9 + $0x204] ss:$8 sps:$4 sm:$0xff]  }
 0x184   :  { %1965 = vmatmul.mubr.bf16.vlgmr.msra.gmra.mrb[0].mxu0 %v1144_v11 }
 0x185   :  { %1976 = vmatpush1.bf16.msra.mxu0 %v2463_v10 }
 0x186   :  { %1977 = vmatprep.subr.bf16.mxu0 %v2468_v12 }
 0x189   :  { %1978 = vmatpush1.bf16.msra.mxu0 %v2466_v13 }
 0x18a   :  { %1979 = vmatprep.subr.bf16.mxu0 %v2471_v14  ;;  %v2511_v14 = vld [vmem:[#allocation9 + $0x200] ss:$8 sps:$4 sm:$0xff]  }
 0x18d   :  { %1980 = vmatpush1.bf16.msra.mxu0 %v2469_v15 }
 0x18e   :  { %1981 = vmatprep.subr.bf16.mxu0 %v2474_v16  ;;  %v2516_v16 = vld [vmem:[#allocation9 + $0x214] ss:$8 sps:$4 sm:$0xff]  }
 0x191   :  { %1982 = vmatpush1.bf16.msra.mxu0 %v2472_v18  ;;  %v2514_v18 = vld [vmem:[#allocation9 + $0x210] ss:$8 sps:$4 sm:$0xff]  }
 0x192   :  { %1983 = vmatprep.subr.bf16.mxu0 %v2477_v19  ;;  %v2519_v19 = vld [vmem:[#allocation9 + $0x224] ss:$8 sps:$4 sm:$0xff]  }
 0x195   :  { %1984 = vmatpush1.bf16.msra.mxu0 %v2475_v20  ;;  %v2517_v20 = vld [vmem:[#allocation9 + $0x220] ss:$8 sps:$4 sm:$0xff]  }
 0x196   :  { %1985 = vmatprep.subr.bf16.mxu0 %v2480_v21  ;;  %v2522_v21 = vld [vmem:[#allocation9 + $0x234] ss:$8 sps:$4 sm:$0xff]  }
 0x199   :  { %1986 = vmatpush1.bf16.msra.mxu0 %v2478_v22  ;;  %v2520_v22 = vld [vmem:[#allocation9 + $0x230] ss:$8 sps:$4 sm:$0xff]  }
 0x19a   :  { %1987 = vmatprep.subr.bf16.mxu0 %v2483_v23  ;;  %v2525_v23 = vld [vmem:[#allocation9 + $0x244] ss:$8 sps:$4 sm:$0xff]  }
 0x19d   :  { %1988 = vmatpush1.bf16.msra.mxu0 %v2481_v24  ;;  %v2523_v24 = vld [vmem:[#allocation9 + $0x240] ss:$8 sps:$4 sm:$0xff]  }
 0x19e   :  { %1989 = vmatprep.subr.bf16.mxu0 %v2486_v25  ;;  %v2528_v25 = vld [vmem:[#allocation9 + $0x254] ss:$8 sps:$4 sm:$0xff]  }
 0x1a1   :  { %v977_v31 = vpop.f32.mrb[4].mxu1  ;;  %1990 = vmatpush1.bf16.msra.mxu0 %v2484_v27  ;;  %v2531_v27 = vld [vmem:[#allocation9 + $0x264] ss:$8 sps:$4 sm:$0xff]  }
 0x1a2   :  { %v978_v34 = vadd.f32 %v977_v31, %v221_v29  ;;  %v979_v35 = vpop.f32.mrb[5].mxu1  ;;  %1991 = vmatprep.subr.bf16.mxu0 %v2489_v30  ;;  %v228_v30 = vsub.s32 4, %v2855_v42  ;;  %v2532_v31 = vld [vmem:[#allocation9 + $0x270] ss:$8 sps:$4 sm:$0xff]  }
 0x1a3   :  { %v981_v37 = vpop.f32.mrb[6].mxu1  ;;  %v980_v40 = vadd.f32 %v979_v35, %v225_v32 }
 0x1a4   :  { %v982_v38 = vadd.f32 %v981_v37, %v221_v29  ;;  %v983_v39 = vpop.f32.mrb[7].mxu1  ;;  %v2534_v29 = vld [vmem:[#allocation9 + $0x274] ss:$8 sps:$4 sm:$0xff]   ;;  %v2535_v37 = vld [vmem:[#allocation9 + $0x280] ss:$8 sps:$4 sm:$0xff]  }
 0x1a5   :  { %v984_v41 = vadd.f32 %v983_v39, %v225_v32  ;;  %1992 = vmatpush1.bf16.msra.mxu0 %v2487_v33  ;;  %v232_v32 = vsub.s32 5, %v2855_v42  ;;  %v229_v33 = vrot.slane %v2858_v44, %v228_v30  ;;  %v2574_v30 = vld [vmem:[#allocation9 + $0x350] ss:$8 sps:$4 sm:$0xff]  }
 0x1a6   :  { %v1074_v47 = vpack.c.bf16 %v982_v38, %v978_v34  ;;  %1993 = vmatprep.subr.bf16.mxu0 %v2492_v36  ;;  %v2537_v34 = vld [vmem:[#allocation9 + $0x284] ss:$8 sps:$4 sm:$0xff]  }
 0x1a7   :  { %v1075_v49 = vpack.c.bf16 %v984_v41, %v980_v40  ;;  %v233_v36 = vrot.slane %v2858_v44, %v232_v32  ;;  %v2540_v40 = vld [vmem:[#allocation9 + $0x294] ss:$8 sps:$4 sm:$0xff]   ;;  %v2577_v32 = vld [vmem:[#allocation9 + $0x360] ss:$8 sps:$4 sm:$0xff]  }
 0x1a8   :  { %v1082_v5 = vmul.bf16 %v1074_v47, %v1074_v47  ;;  %v1122_v12 = vmul.bf16 1056980736, %v1074_v47 }
 0x1a9   :  { %v1083_v50 = vmul.bf16 %v1075_v49, %v1075_v49  ;;  %1994 = vmatpush1.bf16.msra.mxu0 %v2490_v46  ;;  %v1123_v10 = vmul.bf16 1056980736, %v1075_v49 }
 0x1aa   :  { %v1090_v52 = vmul.bf16 %v1082_v5, %v1074_v47  ;;  %1995 = vmatprep.subr.bf16.mxu0 %v2495_v48  ;;  %v2538_v5 = vld [vmem:[#allocation9 + $0x290] ss:$8 sps:$4 sm:$0xff]  }
 0x1ab   :  { %v1091_v54 = vmul.bf16 %v1083_v50, %v1075_v49 }
 0x1ac   :  { %v1098_v55 = vmul.bf16 1027030327, %v1090_v52 }
 0x1ad   :  { %v1099_v56 = vmul.bf16 1027030327, %v1091_v54  ;;  %1996 = vmatpush1.bf16.msra.mxu0 %v2493_v51  ;;  %v2543_v51 = vld [vmem:[#allocation9 + $0x2a4] ss:$8 sps:$4 sm:$0xff]  }
 0x1ae   :  { %v1106_v58 = vadd.bf16 %v1098_v55, %v1074_v47  ;;  %1997 = vmatprep.subr.bf16.mxu0 %v2498_v53  ;;  %v2541_v55 = vld [vmem:[#allocation9 + $0x2a0] ss:$8 sps:$4 sm:$0xff]  }
 0x1af   :  { %v1107_v60 = vadd.bf16 %v1099_v56, %v1075_v49 }
 0x1b0   :  { %v1114_v61 = vmul.bf16 1061961548, %v1106_v58 }
 0x1b1   :  { %1998 = vmatpush1.bf16.msra.mxu0 %v2496_v57  ;;  %v1115_v62 = vmul.bf16 1061961548, %v1107_v60  ;;  %v2546_v57 = vld [vmem:[#allocation9 + $0x2b4] ss:$8 sps:$4 sm:$0xff]  }
 0x1b2   :  { %2611 = vtanh.bf16 %v1114_v61  ;;  %1999 = vmatprep.subr.bf16.mxu0 %v2501_v59  ;;  %v2544_v61 = vld [vmem:[#allocation9 + $0x2b0] ss:$8 sps:$4 sm:$0xff]  }
 0x1b3   :  { %2613 = vtanh.bf16 %v1115_v62  ;;  %v2549_v62 = vld [vmem:[#allocation9 + $0x2c4] ss:$8 sps:$4 sm:$0xff]  }
 0x1b5   :  { %2000 = vmatpush1.bf16.msra.mxu0 %v2499_v17 }
 0x1b6   :  { %2001 = vmatprep.subr.bf16.mxu0 %v2504_v63 }
 0x1b9   :  { %2002 = vmatpush1.bf16.msra.mxu0 %v2502_v0 }
 0x1ba   :  { %2003 = vmatprep.subr.bf16.mxu0 %v2507_v1  ;;  %v2547_v1 = vld [vmem:[#allocation9 + $0x2c0] ss:$8 sps:$4 sm:$0xff]  }
 0x1bd   :  { %v2612_v4 = vpop.eup %2611  ;;  %2004 = vmatpush1.bf16.msra.mxu0 %v2505_v2 }
 0x1be   :  { %v2614_v7 = vpop.eup %2613  ;;  %2005 = vmatprep.subr.bf16.mxu0 %v2510_v3  ;;  %v1138_v8 = vadd.bf16 1065369472, %v2612_v4  ;;  %v2552_v3 = vld [vmem:[#allocation9 + $0x2d4] ss:$8 sps:$4 sm:$0xff]   ;;  %v2550_v4 = vld [vmem:[#allocation9 + $0x2d0] ss:$8 sps:$4 sm:$0xff]  }
 0x1bf   :  { %v1139_v11 = vadd.bf16 1065369472, %v2614_v7  ;;  %v2553_v7 = vld [vmem:[#allocation9 + $0x2e0] ss:$8 sps:$4 sm:$0xff]  }
 0x1c0   :  { %v1146_v15 = vmul.bf16 %v1138_v8, %v1122_v12  ;;  %v2558_v8 = vld [vmem:[#allocation9 + $0x2f4] ss:$8 sps:$4 sm:$0xff]  }
 0x1c1   :  { %2006 = vmatpush1.bf16.msra.mxu0 %v2508_v6  ;;  %v1147_v13 = vmul.bf16 %v1139_v11, %v1123_v10  ;;  %v2555_v6 = vld [vmem:[#allocation9 + $0x2e4] ss:$8 sps:$4 sm:$0xff]   ;;  %v2556_v10 = vld [vmem:[#allocation9 + $0x2f0] ss:$8 sps:$4 sm:$0xff]  }
 0x1c2   :  { %2018 = vmatprep.subr.bf16.mxu0 %v2513_v9 }
 0x1c3   :  { %2007 = vmatprep.mubr.bf16.mxu0 %v1147_v13  ;;  %v2561_v13 = vld [vmem:[#allocation9 + $0x304] ss:$8 sps:$4 sm:$0xff]  }
 0x1c4   :  { %2008 = vmatmul.mubr.bf16.vlgmr.msra.gmra.mrb[0].mxu0 %v1146_v15 }
 0x1c5   :  { %2019 = vmatpush1.bf16.msra.mxu0 %v2511_v14 }
 0x1c6   :  { %2020 = vmatprep.subr.bf16.mxu0 %v2516_v16 }
 0x1c9   :  { %2021 = vmatpush1.bf16.msra.mxu0 %v2514_v18 }
 0x1ca   :  { %2022 = vmatprep.subr.bf16.mxu0 %v2519_v19  ;;  %v2559_v19 = vld [vmem:[#allocation9 + $0x300] ss:$8 sps:$4 sm:$0xff]  }
 0x1cd   :  { %2023 = vmatpush1.bf16.msra.mxu0 %v2517_v20 }
 0x1ce   :  { %2024 = vmatprep.subr.bf16.mxu0 %v2522_v21  ;;  %v2564_v21 = vld [vmem:[#allocation9 + $0x314] ss:$8 sps:$4 sm:$0xff]  }
 0x1d1   :  { %2025 = vmatpush1.bf16.msra.mxu0 %v2520_v22  ;;  %v2562_v22 = vld [vmem:[#allocation9 + $0x310] ss:$8 sps:$4 sm:$0xff]  }
 0x1d2   :  { %2026 = vmatprep.subr.bf16.mxu0 %v2525_v23  ;;  %v2567_v23 = vld [vmem:[#allocation9 + $0x324] ss:$8 sps:$4 sm:$0xff]  }
 0x1d5   :  { %2027 = vmatpush1.bf16.msra.mxu0 %v2523_v24  ;;  %v2565_v24 = vld [vmem:[#allocation9 + $0x320] ss:$8 sps:$4 sm:$0xff]  }
 0x1d6   :  { %2028 = vmatprep.subr.bf16.mxu0 %v2528_v25  ;;  %v2570_v25 = vld [vmem:[#allocation9 + $0x334] ss:$8 sps:$4 sm:$0xff]  }
 0x1d9   :  { %2029 = vmatpush1.bf16.msra.mxu0 %v2526_v26  ;;  %v2568_v26 = vld [vmem:[#allocation9 + $0x330] ss:$8 sps:$4 sm:$0xff]  }
 0x1da   :  { %2030 = vmatprep.subr.bf16.mxu0 %v2531_v27  ;;  %v2573_v27 = vld [vmem:[#allocation9 + $0x344] ss:$8 sps:$4 sm:$0xff]  }
 0x1dd   :  { %2031 = vmatpush1.bf16.msra.mxu0 %v2529_v28  ;;  %v2571_v28 = vld [vmem:[#allocation9 + $0x340] ss:$8 sps:$4 sm:$0xff]  }
 0x1de   :  { %2032 = vmatprep.subr.bf16.mxu0 %v2534_v29  ;;  %v2576_v29 = vld [vmem:[#allocation9 + $0x354] ss:$8 sps:$4 sm:$0xff]  }
 0x1e1   :  { %v1020_v35 = vpop.f32.mrb[8].mxu1  ;;  %2033 = vmatpush1.bf16.msra.mxu0 %v2532_v31  ;;  %v2579_v31 = vld [vmem:[#allocation9 + $0x364] ss:$8 sps:$4 sm:$0xff]  }
 0x1e2   :  { %v1021_v38 = vadd.f32 %v1020_v35, %v229_v33  ;;  %v1022_v39 = vpop.f32.mrb[9].mxu1  ;;  %2034 = vmatprep.subr.bf16.mxu0 %v2537_v34  ;;  %v236_v34 = vsub.s32 6, %v2855_v42  ;;  %v2580_v35 = vld [vmem:[#allocation9 + $0x370] ss:$8 sps:$4 sm:$0xff]  }
 0x1e3   :  { %v1024_v41 = vpop.f32.mrb[10].mxu1  ;;  %v1023_v48 = vadd.f32 %v1022_v39, %v233_v36 }
 0x1e4   :  { %v1025_v46 = vadd.f32 %v1024_v41, %v229_v33  ;;  %v1026_v47 = vpop.f32.mrb[11].mxu1  ;;  %v2582_v33 = vld [vmem:[#allocation9 + $0x374] ss:$8 sps:$4 sm:$0xff]   ;;  %v2583_v41 = vld [vmem:[#allocation9 + $0x380] ss:$8 sps:$4 sm:$0xff]  }
 0x1e5   :  { %v1027_v49 = vadd.f32 %v1026_v47, %v233_v36  ;;  %2035 = vmatpush1.bf16.msra.mxu0 %v2535_v37  ;;  %v240_v36 = vsub.s32 7, %v2855_v42  ;;  %v2585_v37 = vld [vmem:[#allocation9 + $0x384] ss:$8 sps:$4 sm:$0xff]   ;;  %v2588_v47 = vld [vmem:[#allocation9 + $0x394] ss:$8 sps:$4 sm:$0xff]  }
 0x1e6   :  { %v1076_v50 = vpack.c.bf16 %v1025_v46, %v1021_v38  ;;  %2036 = vmatprep.subr.bf16.mxu0 %v2540_v40  ;;  %v237_v38 = vrot.slane %v2858_v44, %v236_v34 }
 0x1e7   :  { %v1077_v52 = vpack.c.bf16 %v1027_v49, %v1023_v48  ;;  %v241_v40 = vrot.slane %v2858_v44, %v240_v36  ;;  %v2589_v44 = vld [vmem:[#allocation9 + $0x3a0] ss:$8 sps:$4 sm:$0xff]  }
 0x1e8   :  { %v1084_v53 = vmul.bf16 %v1076_v50, %v1076_v50  ;;  %v1124_v16 = vmul.bf16 1056980736, %v1076_v50 }
 0x1e9   :  { %v1085_v54 = vmul.bf16 %v1077_v52, %v1077_v52  ;;  %2037 = vmatpush1.bf16.msra.mxu0 %v2538_v5  ;;  %v1125_v14 = vmul.bf16 1056980736, %v1077_v52 }
 0x1ea   :  { %v1092_v56 = vmul.bf16 %v1084_v53, %v1076_v50  ;;  %2038 = vmatprep.subr.bf16.mxu0 %v2543_v51  ;;  %v2586_v53 = vld [vmem:[#allocation9 + $0x390] ss:$8 sps:$4 sm:$0xff]  }
 0x1eb   :  { %v1093_v58 = vmul.bf16 %v1085_v54, %v1077_v52 }
 0x1ec   :  { %v1100_v59 = vmul.bf16 1027030327, %v1092_v56 }
 0x1ed   :  { %v1101_v60 = vmul.bf16 1027030327, %v1093_v58  ;;  %2039 = vmatpush1.bf16.msra.mxu0 %v2541_v55  ;;  %v2591_v55 = vld [vmem:[#allocation9 + $0x3a4] ss:$8 sps:$4 sm:$0xff]  }
 0x1ee   :  { %v1108_v17 = vadd.bf16 %v1100_v59, %v1076_v50  ;;  %2040 = vmatprep.subr.bf16.mxu0 %v2546_v57 }
 0x1ef   :  { %v1109_v63 = vadd.bf16 %v1101_v60, %v1077_v52  ;;  %v2594_v60 = vld [vmem:[#allocation9 + $0x3b4] ss:$8 sps:$4 sm:$0xff]  }
 0x1f0   :  { %v1116_v0 = vmul.bf16 1061961548, %v1108_v17 }
 0x1f1   :  { %2041 = vmatpush1.bf16.msra.mxu0 %v2544_v61  ;;  %v1117_v2 = vmul.bf16 1061961548, %v1109_v63  ;;  %v2592_v63 = vld [vmem:[#allocation9 + $0x3b0] ss:$8 sps:$4 sm:$0xff]  }
 0x1f2   :  { %2615 = vtanh.bf16 %v1116_v0  ;;  %2042 = vmatprep.subr.bf16.mxu0 %v2549_v62 }
 0x1f3   :  { %2617 = vtanh.bf16 %v1117_v2 }
 0x1f5   :  { %2043 = vmatpush1.bf16.msra.mxu0 %v2547_v1  ;;  %v2597_v1 = vld [vmem:[#allocation9 + $0x3c4] ss:$8 sps:$4 sm:$0xff]  }
 0x1f6   :  { %2044 = vmatprep.subr.bf16.mxu0 %v2552_v3 }
 0x1f9   :  { %2045 = vmatpush1.bf16.msra.mxu0 %v2550_v4  ;;  %v2595_v4 = vld [vmem:[#allocation9 + $0x3c0] ss:$8 sps:$4 sm:$0xff]  }
 0x1fa   :  { %2046 = vmatprep.subr.bf16.mxu0 %v2555_v6 }
 0x1fd   :  { %v2616_v9 = vpop.eup %2615  ;;  %2047 = vmatpush1.bf16.msra.mxu0 %v2553_v7  ;;  %v2600_v7 = vld [vmem:[#allocation9 + $0x3d4] ss:$8 sps:$4 sm:$0xff]  }
 0x1fe   :  { %v2618_v11 = vpop.eup %2617  ;;  %2048 = vmatprep.subr.bf16.mxu0 %v2558_v8  ;;  %v1140_v12 = vadd.bf16 1065369472, %v2616_v9  ;;  %v2598_v8 = vld [vmem:[#allocation9 + $0x3d0] ss:$8 sps:$4 sm:$0xff]   ;;  %v2603_v9 = vld [vmem:[#allocation9 + $0x3e4] ss:$8 sps:$4 sm:$0xff]  }
 0x1ff   :  { %v1141_v15 = vadd.bf16 1065369472, %v2618_v11  ;;  %v2606_v11 = vld [vmem:[#allocation9 + $0x3f4] ss:$8 sps:$4 sm:$0xff]  }
 0x200   :  { %v1148_v20 = vmul.bf16 %v1140_v12, %v1124_v16 }
 0x201   :  { %2049 = vmatpush1.bf16.msra.mxu0 %v2556_v10  ;;  %v1149_v18 = vmul.bf16 %v1141_v15, %v1125_v14  ;;  %v2601_v10 = vld [vmem:[#allocation9 + $0x3e0] ss:$8 sps:$4 sm:$0xff]  }
 0x202   :  { %2061 = vmatprep.subr.bf16.mxu0 %v2561_v13  ;;  %v2604_v13 = vld [vmem:[#allocation9 + $0x3f0] ss:$8 sps:$4 sm:$0xff]  }
 0x203   :  { %2050 = vmatprep.mubr.bf16.mxu0 %v1149_v18 }
 0x204   :  { %2051 = vmatmul.mubr.bf16.vlgmr.msra.gmra.mrb[0].mxu0 %v1148_v20 }
 0x205   :  { %2062 = vmatpush1.bf16.msra.mxu0 %v2559_v19 }
 0x206   :  { %2063 = vmatprep.subr.bf16.mxu0 %v2564_v21 }
 0x209   :  { %2064 = vmatpush1.bf16.msra.mxu0 %v2562_v22  ;;  %v1280_v22 = vld [vmem:[%s2902_s4] sm:$0x3]  ;;  %s2711_s4 = scalar_lea.vmem %s2114_s18, 512 }
 0x20a   :  { %2065 = vmatprep.subr.bf16.mxu0 %v2567_v23  ;;  %v1285_v23 = vrot.slane %v1280_v22, %v212_v43  ;;  %p2712_p4 = scmp.ne.s32.totalorder %s2114_s18, %s2711_s4  ;;  %p2717_p6 = scmp.lt.s32.totalorder %s2711_s4, %s2711_s4 }
 0x20c   :  { %p2718_p7 = por %p2717_p6, %p2716_p5 }
 0x20d   :  { %2066 = vmatpush1.bf16.msra.mxu0 %v2565_v24  ;;  %v1289_v24 = vrot.slane %v1280_v22, %v216_v45 }
 0x20e   :  { %2067 = vmatprep.subr.bf16.mxu0 %v2570_v25  ;;  %p2719_p8 = pnand %p2718_p7, %p2712_p4 }
 0x211   :  { %2068 = vmatpush1.bf16.msra.mxu0 %v2568_v26 }
 0x212   :  { %2069 = vmatprep.subr.bf16.mxu0 %v2573_v27 }
 0x215   :  { %2070 = vmatpush1.bf16.msra.mxu0 %v2571_v28 }
 0x216   :  { %2071 = vmatprep.subr.bf16.mxu0 %v2576_v29 }
 0x219   :  { %2072 = vmatpush1.bf16.msra.mxu0 %v2574_v30 }
 0x21a   :  { %2073 = vmatprep.subr.bf16.mxu0 %v2579_v31 }
 0x21d   :  { %2074 = vmatpush1.bf16.msra.mxu0 %v2577_v32 }
 0x21e   :  { %2075 = vmatprep.subr.bf16.mxu0 %v2582_v33 }
 0x221   :  { %v1063_v39 = vpop.f32.mrb[12].mxu1  ;;  %2076 = vmatpush1.bf16.msra.mxu0 %v2580_v35 }
 0x222   :  { %v1065_v46 = vpop.f32.mrb[13].mxu1  ;;  %2077 = vmatprep.subr.bf16.mxu0 %v2585_v37  ;;  %v1064_v49 = vadd.f32 %v1063_v39, %v237_v38 }
 0x223   :  { %v1067_v48 = vpop.f32.mrb[14].mxu1  ;;  %v1066_v51 = vadd.f32 %v1065_v46, %v241_v40 }
 0x224   :  { %v1068_v5 = vadd.f32 %v1067_v48, %v237_v38  ;;  %v1069_v50 = vpop.f32.mrb[15].mxu1 }
 0x225   :  { %v1070_v52 = vadd.f32 %v1069_v50, %v241_v40  ;;  %2078 = vmatpush1.bf16.msra.mxu0 %v2583_v41 }
 0x226   :  { %v1078_v54 = vpack.c.bf16 %v1068_v5, %v1064_v49  ;;  %2079 = vmatprep.subr.bf16.mxu0 %v2588_v47 }
 0x227   :  { %v1079_v56 = vpack.c.bf16 %v1070_v52, %v1066_v51 }
 0x228   :  { %v1086_v57 = vmul.bf16 %v1078_v54, %v1078_v54  ;;  %v1126_v19 = vmul.bf16 1056980736, %v1078_v54 }
 0x229   :  { %v1087_v58 = vmul.bf16 %v1079_v56, %v1079_v56  ;;  %2080 = vmatpush1.bf16.msra.mxu0 %v2586_v53  ;;  %v1127_v16 = vmul.bf16 1056980736, %v1079_v56 }
 0x22a   :  { %v1094_v59 = vmul.bf16 %v1086_v57, %v1078_v54  ;;  %2081 = vmatprep.subr.bf16.mxu0 %v2591_v55 }
 0x22b   :  { %v1095_v61 = vmul.bf16 %v1087_v58, %v1079_v56 }
 0x22c   :  { %v1102_v17 = vmul.bf16 1027030327, %v1094_v59 }
 0x22d   :  { %v1103_v62 = vmul.bf16 1027030327, %v1095_v61  ;;  %2082 = vmatpush1.bf16.msra.mxu0 %v2589_v44 }
 0x22e   :  { %v1110_v0 = vadd.bf16 %v1102_v17, %v1078_v54  ;;  %2083 = vmatprep.subr.bf16.mxu0 %v2594_v60 }
 0x22f   :  { %v1111_v2 = vadd.bf16 %v1103_v62, %v1079_v56 }
 0x230   :  { %v1118_v3 = vmul.bf16 1061961548, %v1110_v0 }
 0x231   :  { %2084 = vmatpush1.bf16.msra.mxu0 %v2592_v63  ;;  %v1119_v6 = vmul.bf16 1061961548, %v1111_v2 }
 0x232   :  { %2619 = vtanh.bf16 %v1118_v3  ;;  %2085 = vmatprep.subr.bf16.mxu0 %v2597_v1 }
 0x233   :  { %2621 = vtanh.bf16 %v1119_v6 }
 0x235   :  { %2086 = vmatpush1.bf16.msra.mxu0 %v2595_v4 }
 0x236   :  { %2087 = vmatprep.subr.bf16.mxu0 %v2600_v7 }
 0x239   :  { %2088 = vmatpush1.bf16.msra.mxu0 %v2598_v8 }
 0x23a   :  { %2089 = vmatprep.subr.bf16.mxu0 %v2603_v9 }
 0x23d   :  { %v2620_v12 = vpop.eup %2619  ;;  %2090 = vmatpush1.bf16.msra.mxu0 %v2601_v10 }
 0x23e   :  { %v2622_v14 = vpop.eup %2621  ;;  %2091 = vmatprep.subr.bf16.mxu0 %v2606_v11  ;;  %v1142_v15 = vadd.bf16 1065369472, %v2620_v12 }
 0x23f   :  { %v1143_v18 = vadd.bf16 1065369472, %v2622_v14 }
 0x240   :  { %v1150_v21 = vmul.bf16 %v1142_v15, %v1126_v19 }
 0x241   :  { %2092 = vmatpush1.bf16.msra.mxu0 %v2604_v13  ;;  %v1151_v20 = vmul.bf16 %v1143_v18, %v1127_v16 }
 0x243   :  { %2093 = vmatprep.mubr.bf16.mxu0 %v1151_v20 }
 0x244   :  { %2094 = vmatmul.mubr.bf16.vlgmr.msra.gmra.mrb[0].mxu0 %v1150_v21 }
 0x317   :  { %v2095_v25 = vpop.f32.mrb[0].mxu0 }
 0x318   :  { %v2385_v26 = vadd.f32 %v2095_v25, %v1285_v23  ;;  %v2097_v27 = vpop.f32.mrb[1].mxu0 }
 0x319   :  { %v2386_v28 = vadd.f32 %v2097_v27, %v1289_v24  ;;  %v2099_v29 = vpop.f32.mrb[2].mxu0 }
 0x31a   :  { %2104 = vst [vmem:[#allocation11] sm:$0xff] %v2385_v26  ;;  %v2387_v30 = vadd.f32 %v2099_v29, %v1285_v23  ;;  %v2101_v31 = vpop.f32.mrb[3].mxu0 }
 0x31b   :  { %2105 = vst [vmem:[#allocation11 + $0x8] sm:$0xff] %v2386_v28  ;;  %v2388_v32 = vadd.f32 %v2101_v31, %v1289_v24 }
 0x31c   :  { %2106 = vst [vmem:[#allocation11 + $0x10] sm:$0xff] %v2387_v30 }
 0x31d   :  { %2107 = vst [vmem:[#allocation11 + $0x18] sm:$0xff] %v2388_v32 }
 0x31e   :  { %2722 = shalt.err (!%p2719_p8)
}
 0x31f   :  { %s2723_s21 = scalar_lea.hbm %s2903_s5, 512 }
 0x320   :  { %p2724_p9 = scmp.ne.s32.totalorder %s2903_s5, %s2723_s21  ;;  %p2727_p10 = scmp.lt.u32.totalorder %s2723_s21, %s2903_s5 }
 0x322   :  { %p2729_p11 = pnand %p2727_p10, %p2724_p9 }
 0x324   :  { %2732 = shalt.err (!%p2729_p11)
}
 0x325   :  { %s2750_s26 = smov 256   ;;  %s2751_s27 = smov 16  }
 0x326   :  { %2119 = dma.vmem_to_hbm [thread:$0]  %s2114_s18, 512, %s2903_s5, [#allocation5], %s2750_s26, %s2750_s26, %s2751_s27  }
 0x327   :  { %2739 = dma.done.wait [#allocation5], 512  }
 0x328   :  { %2740 = vsyncadd [#allocation5], 4294966784 }
 0x329   :  { %2123 = vsyncpa [#allocation4], 1 }
 0x32a   :  { %2124 = vsyncpa [#allocation7], 1 }
 0x32b   :  { %2125 = vsyncpa [#allocation10], 1 }
 0x32c   :  { %2126 = vsyncpa [#allocation5], 1 }

</bundles_post_ra>
